<compile_context>
chip_gen: v7x
topology: tpu7x:2x2x1
jax: 0.10.0
libtpu: 0.0.40
codegen_flags: <defaults>
</compile_context>

<pallas_src>
import functools

import jax
import jax.numpy as jnp
from jax import lax
from jax.experimental import pallas as pl
from jax.experimental.pallas import tpu as pltpu


OUT_LANE_PAD = 128  # lane-dense final store width


# ------------------------------------------------------------------ fused kernel

def _gat_fused_kernel(x_ref, adj_ref, *refs, heads, num_layers, out_channels,
                      negative_slope=0.2):
    """refs = (w_aug0, w_srcT0, b0, ..., w_aug_{L-1}, w_srcT_{L-1}, b_{L-1}, o_ref)."""
    o_ref = refs[-1]
    p_refs = refs[:-1]
    assert len(p_refs) == 3 * num_layers

    H = heads
    # int8 adjacency -> additive mask bias (0 on edges, -1e30 elsewhere); layer-invariant.
    adj_f = adj_ref[...].astype(jnp.float32)                    # [N, N]
    neg_bias = jnp.where(adj_f > 0.0, 0.0, jnp.float32(-1e30))  # [N, N]

    x = x_ref[...].astype(jnp.float32)                          # [N, Fin]
    x_b = x.astype(jnp.bfloat16)
    N = x.shape[0]

    for l in range(num_layers):                                  # static unroll over layers
        wa_ref, wsT_ref, b_ref = p_refs[3 * l: 3 * l + 3]
        HC = wa_ref.shape[1] - H
        C = HC // H

        # One fused projection: columns [:HC] = projected features, [HC:] = alpha_dst.
        xp_aug = jnp.dot(x_b, wa_ref[...].astype(jnp.bfloat16),
                         preferred_element_type=jnp.float32)     # [N, H*C + H]
        xp = xp_aug[:, :HC]                                      # [N, H*C]
        alpha_dst = xp_aug[:, HC:]                               # [N, H]
        # alpha_srcT = (W @ A_src)^T (.) x^T  (transpose folded into dot_general).
        alpha_srcT = lax.dot_general(wsT_ref[...].astype(jnp.bfloat16), x_b,
                                     (((1,), (1,)), ((), ())),
                                     preferred_element_type=jnp.float32)  # [H, N]
        xp_b = xp.astype(jnp.bfloat16)

        acc = jnp.zeros((N, C), jnp.float32)
        for h in range(H):                                       # static unroll over heads
            logits = alpha_dst[:, h:h + 1] + alpha_srcT[h:h + 1, :]   # [N_dst, N_src]
            logits = jnp.maximum(logits, negative_slope * logits)      # LeakyReLU(0.2)
            masked = logits + neg_bias
            m = jnp.max(masked, axis=1, keepdims=True)
            e = jnp.exp(masked - m)                               # masked entries underflow to 0
            denom = jnp.sum(e, axis=1, keepdims=True)             # >0 (self-loops present)
            # 1/H head-mean folded into the EUP reciprocal.
            attn = e * pl.reciprocal(denom * jnp.float32(H), approx=True)
            acc = acc + jnp.dot(attn.astype(jnp.bfloat16),
                                xp_b[:, h * C:(h + 1) * C],
                                preferred_element_type=jnp.float32)

        x = acc + b_ref[...]                                      # concat=False head mean + bias
        x = jnp.maximum(x, 0.0)                                   # ReLU after every conv
        x_b = x.astype(jnp.bfloat16)
        # TODO(synk): F.dropout is identity at inference (training=False); not applied.

    # Final log_softmax restricted to the valid class lanes; padded lanes stored as 0
    # so the single HBM store is a full lane-dense [N, 128] slab.
    out_pad = o_ref.shape[1]
    col = lax.broadcasted_iota(jnp.int32, (N, out_pad), 1)
    valid = col < out_channels
    xm = jnp.where(valid, x, jnp.float32(-1e30))
    m = jnp.max(xm, axis=-1, keepdims=True)
    e = jnp.exp(xm - m)                                           # padded lanes -> exactly 0
    lse = jnp.log(jnp.sum(e, axis=-1, keepdims=True))
    o_ref[...] = jnp.where(valid, xm - m - lse, 0.0)


# ------------------------------------------------------------------ wrappers

def _full_spec(shape):
    nd = len(shape)
    return pl.BlockSpec(shape, lambda i, nd=nd: (0,) * nd)


def _prep_layer_params(w, att_src, att_dst, bias, heads, pad_to=None):
    """Host-side (XLA glue): pad last-layer head width, and fold the per-head attention
    vectors into the projection so the kernel needs only 2 MXU calls per layer."""
    H, C = att_src.shape
    fin = w.shape[0]
    if pad_to is not None and pad_to > C:
        pc = pad_to - C
        w = jnp.pad(w.reshape(fin, H, C), ((0, 0), (0, 0), (0, pc))).reshape(fin, H * pad_to)
        att_src = jnp.pad(att_src, ((0, 0), (0, pc)))
        att_dst = jnp.pad(att_dst, ((0, 0), (0, pc)))
        bias = jnp.pad(bias, (0, pc))
        C = pad_to

    w3 = w.reshape(fin, H, C)
    # alpha_dst = x @ (W @ A_dst): fold into extra columns of the projection weight.
    w_adst = jnp.einsum('fhc,hc->fh', w3, att_dst)                # [Fin, H]
    # alpha_srcT = (W @ A_src)^T (.) x^T: keep transposed so no in-kernel relayout.
    w_srcT = jnp.einsum('fhc,hc->hf', w3, att_src)                # [H, Fin]
    w_aug = jnp.concatenate([w, w_adst], axis=1)                  # [Fin, H*C + H]
    return [w_aug, w_srcT, bias.reshape(1, C)]


def gat_forward(x, adj_i8, params, *, heads, out_channels):
    N = x.shape[0]
    num_layers = len(params)

    flat = []
    for l, (w, a_s, a_d, b) in enumerate(params):
        pad_to = OUT_LANE_PAD if l == num_layers - 1 else None
        flat.extend(_prep_layer_params(w, a_s, a_d, b, heads, pad_to=pad_to))

    kernel = functools.partial(_gat_fused_kernel, heads=heads, num_layers=num_layers,
                               out_channels=out_channels)
    in_arrays = [x, adj_i8] + flat

    out_padded = pl.pallas_call(
        kernel,
        out_shape=jax.ShapeDtypeStruct((N, OUT_LANE_PAD), jnp.float32),
        grid=(1,),
        in_specs=[_full_spec(a.shape) for a in in_arrays],
        out_specs=_full_spec((N, OUT_LANE_PAD)),
        compiler_params=pltpu.CompilerParams(dimension_semantics=("arbitrary",)),
    )(*in_arrays)
    # TODO(synk): graph_classification=False here, so the global_mean_pool branch is not exercised.
    return out_padded[:, :out_channels]


# ------------------------------------------------------------------ params / reference

def init_gat_params(key, in_channels, hidden, out_channels, num_layers, heads):
    dims = ([(in_channels, hidden)]
            + [(hidden, hidden)] * (num_layers - 2)
            + [(hidden, out_channels)])
    params = []
    for fin, fout in dims:
        key, k1, k2, k3 = jax.random.split(key, 4)
        scale = (2.0 / (fin + heads * fout)) ** 0.5
        w = scale * jax.random.normal(k1, (fin, heads * fout), jnp.float32)
        att_src = 0.1 * jax.random.normal(k2, (heads, fout), jnp.float32)
        att_dst = 0.1 * jax.random.normal(k3, (heads, fout), jnp.float32)
        bias = jnp.zeros((fout,), jnp.float32)
        params.append((w, att_src, att_dst, bias))
    return params


def gat_reference(x, adj, params, *, heads):
    """Pure-JAX reference mirroring the module semantics (bf16 MXU feeds, f32 accumulation)."""
    adj_f = (adj > 0).astype(jnp.float32)
    for (w, a_s, a_d, b) in params:
        N = x.shape[0]
        C = w.shape[1] // heads
        xp = jnp.dot(x.astype(jnp.bfloat16), w.astype(jnp.bfloat16),
                     preferred_element_type=jnp.float32).reshape(N, heads, C)
        xp_b = xp.astype(jnp.bfloat16)
        asc = jnp.einsum('nhc,hc->nh', xp_b, a_s.astype(jnp.bfloat16),
                         preferred_element_type=jnp.float32)
        adc = jnp.einsum('nhc,hc->nh', xp_b, a_d.astype(jnp.bfloat16),
                         preferred_element_type=jnp.float32)
        logits = adc[:, None, :] + asc[None, :, :]               # [dst, src, head]
        logits = jnp.where(logits > 0, logits, 0.2 * logits)
        masked = jnp.where(adj_f[:, :, None] > 0, logits, -1e30)
        attn = jax.nn.softmax(masked, axis=1) * adj_f[:, :, None]
        out = jnp.einsum('ijh,jhc->ihc', attn.astype(jnp.bfloat16), xp_b,
                         preferred_element_type=jnp.float32).mean(axis=1) + b
        x = jnp.maximum(out, 0.0)
    return jax.nn.log_softmax(x, axis=-1)


# ------------------------------------------------------------------ main

if __name__ == "__main__":
    key = jax.random.PRNGKey(0)

    # Small synthetic graph consistent with the module's forward.
    N = 16                 # nodes
    in_channels = 8
    hidden_units = 32
    out_channels = 4
    heads = 4
    number_layers = 3
    num_edges = 40

    key, kx, ke1, ke2, kp = jax.random.split(key, 5)
    x = jax.random.normal(kx, (N, in_channels), jnp.float32)
    src = jax.random.randint(ke1, (num_edges,), 0, N)
    dst = jax.random.randint(ke2, (num_edges,), 0, N)
    # edge_index = [src; dst] (2, E).  Dense int8 adjacency mask with self-loops
    # (row i = incoming edges of node i, matching GATConv(add_self_loops=True)).
    adj = jnp.zeros((N, N), jnp.int8).at[dst, src].set(1)
    adj = adj.at[jnp.arange(N), jnp.arange(N)].set(1)

    params = init_gat_params(kp, in_channels, hidden_units, out_channels,
                             number_layers, heads)

    out = gat_forward(x, adj, params, heads=heads, out_channels=out_channels)
    out = jax.block_until_ready(out)

    ref = gat_reference(x, adj, params, heads=heads)
    assert out.shape == (N, out_channels)
    assert bool(jnp.all(jnp.isfinite(out)))
    # log_softmax rows must logsumexp to ~0, and match the pure-JAX reference
    # (tolerance covers the approx-reciprocal softmax + bf16 rounding / fold-order
    # differences).
    assert bool(jnp.allclose(jax.scipy.special.logsumexp(out, axis=-1),
                             jnp.zeros((N,)), atol=1e-4))
    assert bool(jnp.allclose(out, ref, atol=1e-2, rtol=1e-2))

    print("KERNEL_OK")
</pallas_src>

<mosaic_0001>
module attributes {stable_mosaic.version = 11 : i64} {
  func.func @_gat_fused_kernel(%arg0: i32, %arg1: memref<16x8xf32, #tpu.memory_space<vmem>>, %arg2: memref<16x16xi8, #tpu.memory_space<vmem>>, %arg3: memref<8x132xf32, #tpu.memory_space<vmem>>, %arg4: memref<4x8xf32, #tpu.memory_space<vmem>>, %arg5: memref<1x32xf32, #tpu.memory_space<vmem>>, %arg6: memref<32x132xf32, #tpu.memory_space<vmem>>, %arg7: memref<4x32xf32, #tpu.memory_space<vmem>>, %arg8: memref<1x32xf32, #tpu.memory_space<vmem>>, %arg9: memref<32x516xf32, #tpu.memory_space<vmem>>, %arg10: memref<4x32xf32, #tpu.memory_space<vmem>>, %arg11: memref<1x128xf32, #tpu.memory_space<vmem>>, %arg12: memref<16x128xf32, #tpu.memory_space<vmem>>) attributes {dimension_semantics = [#tpu.dimension_semantics<arbitrary>], iteration_bounds = array<i64: 1>, scalar_prefetch = 0 : i64, scratch_operands = 0 : i64, tpu.core_type = #tpu.core_type<tc>, window_params = [{pipeline_mode = #tpu.pipeline_mode<synchronous>, transform_indices = @transform_0, window_bounds = array<i64: 16, 8>}, {pipeline_mode = #tpu.pipeline_mode<synchronous>, transform_indices = @transform_1, window_bounds = array<i64: 16, 16>}, {pipeline_mode = #tpu.pipeline_mode<synchronous>, transform_indices = @transform_2, window_bounds = array<i64: 8, 132>}, {pipeline_mode = #tpu.pipeline_mode<synchronous>, transform_indices = @transform_3, window_bounds = array<i64: 4, 8>}, {pipeline_mode = #tpu.pipeline_mode<synchronous>, transform_indices = @transform_4, window_bounds = array<i64: 1, 32>}, {pipeline_mode = #tpu.pipeline_mode<synchronous>, transform_indices = @transform_5, window_bounds = array<i64: 32, 132>}, {pipeline_mode = #tpu.pipeline_mode<synchronous>, transform_indices = @transform_6, window_bounds = array<i64: 4, 32>}, {pipeline_mode = #tpu.pipeline_mode<synchronous>, transform_indices = @transform_7, window_bounds = array<i64: 1, 32>}, {pipeline_mode = #tpu.pipeline_mode<synchronous>, transform_indices = @transform_8, window_bounds = array<i64: 32, 516>}, {pipeline_mode = #tpu.pipeline_mode<synchronous>, transform_indices = @transform_9, window_bounds = array<i64: 4, 32>}, {pipeline_mode = #tpu.pipeline_mode<synchronous>, transform_indices = @transform_10, window_bounds = array<i64: 1, 128>}, {pipeline_mode = #tpu.pipeline_mode<synchronous>, transform_indices = @transform_11, window_bounds = array<i64: 16, 128>}]} {
    %c0 = arith.constant 0 : index
    %c0_0 = arith.constant 0 : index
    %0 = vector.load %arg2[%c0, %c0_0] : memref<16x16xi8, #tpu.memory_space<vmem>>, vector<16x16xi8>
    %1 = arith.sitofp %0 : vector<16x16xi8> to vector<16x16xf32>
    %cst = arith.constant 0.000000e+00 : f32
    %2 = vector.broadcast %cst : f32 to vector<16x16xf32>
    %3 = arith.cmpf ogt, %1, %2 : vector<16x16xf32>
    %cst_1 = arith.constant 0.000000e+00 : f32
    %cst_2 = arith.constant -1.000000e+30 : f32
    %4 = vector.broadcast %cst_1 : f32 to vector<16x16xf32>
    %5 = vector.broadcast %cst_2 : f32 to vector<16x16xf32>
    %6 = arith.select %3, %4, %5 : vector<16x16xi1>, vector<16x16xf32>
    %c0_3 = arith.constant 0 : index
    %c0_4 = arith.constant 0 : index
    %7 = vector.load %arg1[%c0_3, %c0_4] : memref<16x8xf32, #tpu.memory_space<vmem>>, vector<16x8xf32>
    %8 = arith.truncf %7 : vector<16x8xf32> to vector<16x8xbf16>
    %c0_5 = arith.constant 0 : index
    %c0_6 = arith.constant 0 : index
    %9 = vector.load %arg3[%c0_5, %c0_6] : memref<8x132xf32, #tpu.memory_space<vmem>>, vector<8x132xf32>
    %10 = arith.truncf %9 : vector<8x132xf32> to vector<8x132xbf16>
    %cst_7 = arith.constant dense<0.000000e+00> : vector<16x132xf32>
    %11 = tpu.matmul %8, %10, %cst_7 {dimension_numbers = #tpu.dot_dimension_numbers<[1], [0], [0], [1], [0, 0, 1, 1], [], []>} : vector<16x8xbf16>, vector<8x132xbf16>, vector<16x132xf32> -> vector<16x132xf32>
    %12 = vector.extract_strided_slice %11 {offsets = [0, 0], sizes = [16, 128], strides = [1, 1]} : vector<16x132xf32> to vector<16x128xf32>
    %13 = vector.extract_strided_slice %11 {offsets = [0, 128], sizes = [16, 4], strides = [1, 1]} : vector<16x132xf32> to vector<16x4xf32>
    %c0_8 = arith.constant 0 : index
    %c0_9 = arith.constant 0 : index
    %14 = vector.load %arg4[%c0_8, %c0_9] : memref<4x8xf32, #tpu.memory_space<vmem>>, vector<4x8xf32>
    %15 = arith.truncf %14 : vector<4x8xf32> to vector<4x8xbf16>
    %cst_10 = arith.constant dense<0.000000e+00> : vector<4x16xf32>
    %16 = tpu.matmul %15, %8, %cst_10 {dimension_numbers = #tpu.dot_dimension_numbers<[1], [1], [0], [0], [0, 0, 1, 0], [], []>} : vector<4x8xbf16>, vector<16x8xbf16>, vector<4x16xf32> -> vector<4x16xf32>
    %17 = arith.truncf %12 : vector<16x128xf32> to vector<16x128xbf16>
    %cst_11 = arith.constant 0.000000e+00 : f32
    %18 = vector.broadcast %cst_11 : f32 to vector<16x32xf32>
    %19 = vector.extract_strided_slice %13 {offsets = [0, 0], sizes = [16, 1], strides = [1, 1]} : vector<16x4xf32> to vector<16x1xf32>
    %20 = vector.extract_strided_slice %16 {offsets = [0, 0], sizes = [1, 16], strides = [1, 1]} : vector<4x16xf32> to vector<1x16xf32>
    %21 = vector.broadcast %19 : vector<16x1xf32> to vector<16x16xf32>
    %22 = vector.broadcast %20 : vector<1x16xf32> to vector<16x16xf32>
    %23 = arith.addf %21, %22 : vector<16x16xf32>
    %cst_12 = arith.constant 2.000000e-01 : f32
    %24 = vector.broadcast %cst_12 : f32 to vector<16x16xf32>
    %25 = arith.mulf %24, %23 : vector<16x16xf32>
    %26 = arith.maximumf %23, %25 : vector<16x16xf32>
    %27 = arith.addf %26, %6 : vector<16x16xf32>
    %cst_13 = arith.constant dense<0xFF800000> : vector<16xf32>
    %28 = vector.multi_reduction <maximumf>, %27, %cst_13 [1] : vector<16x16xf32> to vector<16xf32>
    %29 = vector.shape_cast %28 : vector<16xf32> to vector<16x1xf32>
    %30 = vector.broadcast %29 : vector<16x1xf32> to vector<16x16xf32>
    %31 = arith.subf %27, %30 : vector<16x16xf32>
    %32 = math.exp %31 : vector<16x16xf32>
    %cst_14 = arith.constant dense<0.000000e+00> : vector<16xf32>
    %33 = vector.multi_reduction <add>, %32, %cst_14 [1] : vector<16x16xf32> to vector<16xf32>
    %34 = vector.shape_cast %33 : vector<16xf32> to vector<16x1xf32>
    %cst_15 = arith.constant 4.000000e+00 : f32
    %35 = vector.broadcast %cst_15 : f32 to vector<16x1xf32>
    %36 = arith.mulf %34, %35 : vector<16x1xf32>
    %37 = tpu.reciprocal %36 {approx = true} : vector<16x1xf32> -> vector<16x1xf32>
    %38 = vector.broadcast %37 : vector<16x1xf32> to vector<16x16xf32>
    %39 = arith.mulf %32, %38 : vector<16x16xf32>
    %40 = arith.truncf %39 : vector<16x16xf32> to vector<16x16xbf16>
    %41 = vector.extract_strided_slice %17 {offsets = [0, 0], sizes = [16, 32], strides = [1, 1]} : vector<16x128xbf16> to vector<16x32xbf16>
    %cst_16 = arith.constant dense<0.000000e+00> : vector<16x32xf32>
    %42 = tpu.matmul %40, %41, %cst_16 {dimension_numbers = #tpu.dot_dimension_numbers<[1], [0], [0], [1], [0, 0, 1, 1], [], []>} : vector<16x16xbf16>, vector<16x32xbf16>, vector<16x32xf32> -> vector<16x32xf32>
    %43 = arith.addf %18, %42 : vector<16x32xf32>
    %44 = vector.extract_strided_slice %13 {offsets = [0, 1], sizes = [16, 1], strides = [1, 1]} : vector<16x4xf32> to vector<16x1xf32>
    %45 = vector.extract_strided_slice %16 {offsets = [1, 0], sizes = [1, 16], strides = [1, 1]} : vector<4x16xf32> to vector<1x16xf32>
    %46 = vector.broadcast %44 : vector<16x1xf32> to vector<16x16xf32>
    %47 = vector.broadcast %45 : vector<1x16xf32> to vector<16x16xf32>
    %48 = arith.addf %46, %47 : vector<16x16xf32>
    %cst_17 = arith.constant 2.000000e-01 : f32
    %49 = vector.broadcast %cst_17 : f32 to vector<16x16xf32>
    %50 = arith.mulf %49, %48 : vector<16x16xf32>
    %51 = arith.maximumf %48, %50 : vector<16x16xf32>
    %52 = arith.addf %51, %6 : vector<16x16xf32>
    %cst_18 = arith.constant dense<0xFF800000> : vector<16xf32>
    %53 = vector.multi_reduction <maximumf>, %52, %cst_18 [1] : vector<16x16xf32> to vector<16xf32>
    %54 = vector.shape_cast %53 : vector<16xf32> to vector<16x1xf32>
    %55 = vector.broadcast %54 : vector<16x1xf32> to vector<16x16xf32>
    %56 = arith.subf %52, %55 : vector<16x16xf32>
    %57 = math.exp %56 : vector<16x16xf32>
    %cst_19 = arith.constant dense<0.000000e+00> : vector<16xf32>
    %58 = vector.multi_reduction <add>, %57, %cst_19 [1] : vector<16x16xf32> to vector<16xf32>
    %59 = vector.shape_cast %58 : vector<16xf32> to vector<16x1xf32>
    %cst_20 = arith.constant 4.000000e+00 : f32
    %60 = vector.broadcast %cst_20 : f32 to vector<16x1xf32>
    %61 = arith.mulf %59, %60 : vector<16x1xf32>
    %62 = tpu.reciprocal %61 {approx = true} : vector<16x1xf32> -> vector<16x1xf32>
    %63 = vector.broadcast %62 : vector<16x1xf32> to vector<16x16xf32>
    %64 = arith.mulf %57, %63 : vector<16x16xf32>
    %65 = arith.truncf %64 : vector<16x16xf32> to vector<16x16xbf16>
    %66 = vector.extract_strided_slice %17 {offsets = [0, 32], sizes = [16, 32], strides = [1, 1]} : vector<16x128xbf16> to vector<16x32xbf16>
    %cst_21 = arith.constant dense<0.000000e+00> : vector<16x32xf32>
    %67 = tpu.matmul %65, %66, %cst_21 {dimension_numbers = #tpu.dot_dimension_numbers<[1], [0], [0], [1], [0, 0, 1, 1], [], []>} : vector<16x16xbf16>, vector<16x32xbf16>, vector<16x32xf32> -> vector<16x32xf32>
    %68 = arith.addf %43, %67 : vector<16x32xf32>
    %69 = vector.extract_strided_slice %13 {offsets = [0, 2], sizes = [16, 1], strides = [1, 1]} : vector<16x4xf32> to vector<16x1xf32>
    %70 = vector.extract_strided_slice %16 {offsets = [2, 0], sizes = [1, 16], strides = [1, 1]} : vector<4x16xf32> to vector<1x16xf32>
    %71 = vector.broadcast %69 : vector<16x1xf32> to vector<16x16xf32>
    %72 = vector.broadcast %70 : vector<1x16xf32> to vector<16x16xf32>
    %73 = arith.addf %71, %72 : vector<16x16xf32>
    %cst_22 = arith.constant 2.000000e-01 : f32
    %74 = vector.broadcast %cst_22 : f32 to vector<16x16xf32>
    %75 = arith.mulf %74, %73 : vector<16x16xf32>
    %76 = arith.maximumf %73, %75 : vector<16x16xf32>
    %77 = arith.addf %76, %6 : vector<16x16xf32>
    %cst_23 = arith.constant dense<0xFF800000> : vector<16xf32>
    %78 = vector.multi_reduction <maximumf>, %77, %cst_23 [1] : vector<16x16xf32> to vector<16xf32>
    %79 = vector.shape_cast %78 : vector<16xf32> to vector<16x1xf32>
    %80 = vector.broadcast %79 : vector<16x1xf32> to vector<16x16xf32>
    %81 = arith.subf %77, %80 : vector<16x16xf32>
    %82 = math.exp %81 : vector<16x16xf32>
    %cst_24 = arith.constant dense<0.000000e+00> : vector<16xf32>
    %83 = vector.multi_reduction <add>, %82, %cst_24 [1] : vector<16x16xf32> to vector<16xf32>
    %84 = vector.shape_cast %83 : vector<16xf32> to vector<16x1xf32>
    %cst_25 = arith.constant 4.000000e+00 : f32
    %85 = vector.broadcast %cst_25 : f32 to vector<16x1xf32>
    %86 = arith.mulf %84, %85 : vector<16x1xf32>
    %87 = tpu.reciprocal %86 {approx = true} : vector<16x1xf32> -> vector<16x1xf32>
    %88 = vector.broadcast %87 : vector<16x1xf32> to vector<16x16xf32>
    %89 = arith.mulf %82, %88 : vector<16x16xf32>
    %90 = arith.truncf %89 : vector<16x16xf32> to vector<16x16xbf16>
    %91 = vector.extract_strided_slice %17 {offsets = [0, 64], sizes = [16, 32], strides = [1, 1]} : vector<16x128xbf16> to vector<16x32xbf16>
    %cst_26 = arith.constant dense<0.000000e+00> : vector<16x32xf32>
    %92 = tpu.matmul %90, %91, %cst_26 {dimension_numbers = #tpu.dot_dimension_numbers<[1], [0], [0], [1], [0, 0, 1, 1], [], []>} : vector<16x16xbf16>, vector<16x32xbf16>, vector<16x32xf32> -> vector<16x32xf32>
    %93 = arith.addf %68, %92 : vector<16x32xf32>
    %94 = vector.extract_strided_slice %13 {offsets = [0, 3], sizes = [16, 1], strides = [1, 1]} : vector<16x4xf32> to vector<16x1xf32>
    %95 = vector.extract_strided_slice %16 {offsets = [3, 0], sizes = [1, 16], strides = [1, 1]} : vector<4x16xf32> to vector<1x16xf32>
    %96 = vector.broadcast %94 : vector<16x1xf32> to vector<16x16xf32>
    %97 = vector.broadcast %95 : vector<1x16xf32> to vector<16x16xf32>
    %98 = arith.addf %96, %97 : vector<16x16xf32>
    %cst_27 = arith.constant 2.000000e-01 : f32
    %99 = vector.broadcast %cst_27 : f32 to vector<16x16xf32>
    %100 = arith.mulf %99, %98 : vector<16x16xf32>
    %101 = arith.maximumf %98, %100 : vector<16x16xf32>
    %102 = arith.addf %101, %6 : vector<16x16xf32>
    %cst_28 = arith.constant dense<0xFF800000> : vector<16xf32>
    %103 = vector.multi_reduction <maximumf>, %102, %cst_28 [1] : vector<16x16xf32> to vector<16xf32>
    %104 = vector.shape_cast %103 : vector<16xf32> to vector<16x1xf32>
    %105 = vector.broadcast %104 : vector<16x1xf32> to vector<16x16xf32>
    %106 = arith.subf %102, %105 : vector<16x16xf32>
    %107 = math.exp %106 : vector<16x16xf32>
    %cst_29 = arith.constant dense<0.000000e+00> : vector<16xf32>
    %108 = vector.multi_reduction <add>, %107, %cst_29 [1] : vector<16x16xf32> to vector<16xf32>
    %109 = vector.shape_cast %108 : vector<16xf32> to vector<16x1xf32>
    %cst_30 = arith.constant 4.000000e+00 : f32
    %110 = vector.broadcast %cst_30 : f32 to vector<16x1xf32>
    %111 = arith.mulf %109, %110 : vector<16x1xf32>
    %112 = tpu.reciprocal %111 {approx = true} : vector<16x1xf32> -> vector<16x1xf32>
    %113 = vector.broadcast %112 : vector<16x1xf32> to vector<16x16xf32>
    %114 = arith.mulf %107, %113 : vector<16x16xf32>
    %115 = arith.truncf %114 : vector<16x16xf32> to vector<16x16xbf16>
    %116 = vector.extract_strided_slice %17 {offsets = [0, 96], sizes = [16, 32], strides = [1, 1]} : vector<16x128xbf16> to vector<16x32xbf16>
    %cst_31 = arith.constant dense<0.000000e+00> : vector<16x32xf32>
    %117 = tpu.matmul %115, %116, %cst_31 {dimension_numbers = #tpu.dot_dimension_numbers<[1], [0], [0], [1], [0, 0, 1, 1], [], []>} : vector<16x16xbf16>, vector<16x32xbf16>, vector<16x32xf32> -> vector<16x32xf32>
    %118 = arith.addf %93, %117 : vector<16x32xf32>
    %c0_32 = arith.constant 0 : index
    %c0_33 = arith.constant 0 : index
    %119 = vector.load %arg5[%c0_32, %c0_33] : memref<1x32xf32, #tpu.memory_space<vmem>>, vector<1x32xf32>
    %120 = vector.broadcast %119 : vector<1x32xf32> to vector<16x32xf32>
    %121 = arith.addf %118, %120 : vector<16x32xf32>
    %cst_34 = arith.constant 0.000000e+00 : f32
    %122 = vector.broadcast %cst_34 : f32 to vector<16x32xf32>
    %123 = arith.maximumf %121, %122 : vector<16x32xf32>
    %124 = arith.truncf %123 : vector<16x32xf32> to vector<16x32xbf16>
    %c0_35 = arith.constant 0 : index
    %c0_36 = arith.constant 0 : index
    %125 = vector.load %arg6[%c0_35, %c0_36] : memref<32x132xf32, #tpu.memory_space<vmem>>, vector<32x132xf32>
    %126 = arith.truncf %125 : vector<32x132xf32> to vector<32x132xbf16>
    %cst_37 = arith.constant dense<0.000000e+00> : vector<16x132xf32>
    %127 = tpu.matmul %124, %126, %cst_37 {dimension_numbers = #tpu.dot_dimension_numbers<[1], [0], [0], [1], [0, 0, 1, 1], [], []>} : vector<16x32xbf16>, vector<32x132xbf16>, vector<16x132xf32> -> vector<16x132xf32>
    %128 = vector.extract_strided_slice %127 {offsets = [0, 0], sizes = [16, 128], strides = [1, 1]} : vector<16x132xf32> to vector<16x128xf32>
    %129 = vector.extract_strided_slice %127 {offsets = [0, 128], sizes = [16, 4], strides = [1, 1]} : vector<16x132xf32> to vector<16x4xf32>
    %c0_38 = arith.constant 0 : index
    %c0_39 = arith.constant 0 : index
    %130 = vector.load %arg7[%c0_38, %c0_39] : memref<4x32xf32, #tpu.memory_space<vmem>>, vector<4x32xf32>
    %131 = arith.truncf %130 : vector<4x32xf32> to vector<4x32xbf16>
    %cst_40 = arith.constant dense<0.000000e+00> : vector<4x16xf32>
    %132 = tpu.matmul %131, %124, %cst_40 {dimension_numbers = #tpu.dot_dimension_numbers<[1], [1], [0], [0], [0, 0, 1, 0], [], []>} : vector<4x32xbf16>, vector<16x32xbf16>, vector<4x16xf32> -> vector<4x16xf32>
    %133 = arith.truncf %128 : vector<16x128xf32> to vector<16x128xbf16>
    %cst_41 = arith.constant 0.000000e+00 : f32
    %134 = vector.broadcast %cst_41 : f32 to vector<16x32xf32>
    %135 = vector.extract_strided_slice %129 {offsets = [0, 0], sizes = [16, 1], strides = [1, 1]} : vector<16x4xf32> to vector<16x1xf32>
    %136 = vector.extract_strided_slice %132 {offsets = [0, 0], sizes = [1, 16], strides = [1, 1]} : vector<4x16xf32> to vector<1x16xf32>
    %137 = vector.broadcast %135 : vector<16x1xf32> to vector<16x16xf32>
    %138 = vector.broadcast %136 : vector<1x16xf32> to vector<16x16xf32>
    %139 = arith.addf %137, %138 : vector<16x16xf32>
    %cst_42 = arith.constant 2.000000e-01 : f32
    %140 = vector.broadcast %cst_42 : f32 to vector<16x16xf32>
    %141 = arith.mulf %140, %139 : vector<16x16xf32>
    %142 = arith.maximumf %139, %141 : vector<16x16xf32>
    %143 = arith.addf %142, %6 : vector<16x16xf32>
    %cst_43 = arith.constant dense<0xFF800000> : vector<16xf32>
    %144 = vector.multi_reduction <maximumf>, %143, %cst_43 [1] : vector<16x16xf32> to vector<16xf32>
    %145 = vector.shape_cast %144 : vector<16xf32> to vector<16x1xf32>
    %146 = vector.broadcast %145 : vector<16x1xf32> to vector<16x16xf32>
    %147 = arith.subf %143, %146 : vector<16x16xf32>
    %148 = math.exp %147 : vector<16x16xf32>
    %cst_44 = arith.constant dense<0.000000e+00> : vector<16xf32>
    %149 = vector.multi_reduction <add>, %148, %cst_44 [1] : vector<16x16xf32> to vector<16xf32>
    %150 = vector.shape_cast %149 : vector<16xf32> to vector<16x1xf32>
    %cst_45 = arith.constant 4.000000e+00 : f32
    %151 = vector.broadcast %cst_45 : f32 to vector<16x1xf32>
    %152 = arith.mulf %150, %151 : vector<16x1xf32>
    %153 = tpu.reciprocal %152 {approx = true} : vector<16x1xf32> -> vector<16x1xf32>
    %154 = vector.broadcast %153 : vector<16x1xf32> to vector<16x16xf32>
    %155 = arith.mulf %148, %154 : vector<16x16xf32>
    %156 = arith.truncf %155 : vector<16x16xf32> to vector<16x16xbf16>
    %157 = vector.extract_strided_slice %133 {offsets = [0, 0], sizes = [16, 32], strides = [1, 1]} : vector<16x128xbf16> to vector<16x32xbf16>
    %cst_46 = arith.constant dense<0.000000e+00> : vector<16x32xf32>
    %158 = tpu.matmul %156, %157, %cst_46 {dimension_numbers = #tpu.dot_dimension_numbers<[1], [0], [0], [1], [0, 0, 1, 1], [], []>} : vector<16x16xbf16>, vector<16x32xbf16>, vector<16x32xf32> -> vector<16x32xf32>
    %159 = arith.addf %134, %158 : vector<16x32xf32>
    %160 = vector.extract_strided_slice %129 {offsets = [0, 1], sizes = [16, 1], strides = [1, 1]} : vector<16x4xf32> to vector<16x1xf32>
    %161 = vector.extract_strided_slice %132 {offsets = [1, 0], sizes = [1, 16], strides = [1, 1]} : vector<4x16xf32> to vector<1x16xf32>
    %162 = vector.broadcast %160 : vector<16x1xf32> to vector<16x16xf32>
    %163 = vector.broadcast %161 : vector<1x16xf32> to vector<16x16xf32>
    %164 = arith.addf %162, %163 : vector<16x16xf32>
    %cst_47 = arith.constant 2.000000e-01 : f32
    %165 = vector.broadcast %cst_47 : f32 to vector<16x16xf32>
    %166 = arith.mulf %165, %164 : vector<16x16xf32>
    %167 = arith.maximumf %164, %166 : vector<16x16xf32>
    %168 = arith.addf %167, %6 : vector<16x16xf32>
    %cst_48 = arith.constant dense<0xFF800000> : vector<16xf32>
    %169 = vector.multi_reduction <maximumf>, %168, %cst_48 [1] : vector<16x16xf32> to vector<16xf32>
    %170 = vector.shape_cast %169 : vector<16xf32> to vector<16x1xf32>
    %171 = vector.broadcast %170 : vector<16x1xf32> to vector<16x16xf32>
    %172 = arith.subf %168, %171 : vector<16x16xf32>
    %173 = math.exp %172 : vector<16x16xf32>
    %cst_49 = arith.constant dense<0.000000e+00> : vector<16xf32>
    %174 = vector.multi_reduction <add>, %173, %cst_49 [1] : vector<16x16xf32> to vector<16xf32>
    %175 = vector.shape_cast %174 : vector<16xf32> to vector<16x1xf32>
    %cst_50 = arith.constant 4.000000e+00 : f32
    %176 = vector.broadcast %cst_50 : f32 to vector<16x1xf32>
    %177 = arith.mulf %175, %176 : vector<16x1xf32>
    %178 = tpu.reciprocal %177 {approx = true} : vector<16x1xf32> -> vector<16x1xf32>
    %179 = vector.broadcast %178 : vector<16x1xf32> to vector<16x16xf32>
    %180 = arith.mulf %173, %179 : vector<16x16xf32>
    %181 = arith.truncf %180 : vector<16x16xf32> to vector<16x16xbf16>
    %182 = vector.extract_strided_slice %133 {offsets = [0, 32], sizes = [16, 32], strides = [1, 1]} : vector<16x128xbf16> to vector<16x32xbf16>
    %cst_51 = arith.constant dense<0.000000e+00> : vector<16x32xf32>
    %183 = tpu.matmul %181, %182, %cst_51 {dimension_numbers = #tpu.dot_dimension_numbers<[1], [0], [0], [1], [0, 0, 1, 1], [], []>} : vector<16x16xbf16>, vector<16x32xbf16>, vector<16x32xf32> -> vector<16x32xf32>
    %184 = arith.addf %159, %183 : vector<16x32xf32>
    %185 = vector.extract_strided_slice %129 {offsets = [0, 2], sizes = [16, 1], strides = [1, 1]} : vector<16x4xf32> to vector<16x1xf32>
    %186 = vector.extract_strided_slice %132 {offsets = [2, 0], sizes = [1, 16], strides = [1, 1]} : vector<4x16xf32> to vector<1x16xf32>
    %187 = vector.broadcast %185 : vector<16x1xf32> to vector<16x16xf32>
    %188 = vector.broadcast %186 : vector<1x16xf32> to vector<16x16xf32>
    %189 = arith.addf %187, %188 : vector<16x16xf32>
    %cst_52 = arith.constant 2.000000e-01 : f32
    %190 = vector.broadcast %cst_52 : f32 to vector<16x16xf32>
    %191 = arith.mulf %190, %189 : vector<16x16xf32>
    %192 = arith.maximumf %189, %191 : vector<16x16xf32>
    %193 = arith.addf %192, %6 : vector<16x16xf32>
    %cst_53 = arith.constant dense<0xFF800000> : vector<16xf32>
    %194 = vector.multi_reduction <maximumf>, %193, %cst_53 [1] : vector<16x16xf32> to vector<16xf32>
    %195 = vector.shape_cast %194 : vector<16xf32> to vector<16x1xf32>
    %196 = vector.broadcast %195 : vector<16x1xf32> to vector<16x16xf32>
    %197 = arith.subf %193, %196 : vector<16x16xf32>
    %198 = math.exp %197 : vector<16x16xf32>
    %cst_54 = arith.constant dense<0.000000e+00> : vector<16xf32>
    %199 = vector.multi_reduction <add>, %198, %cst_54 [1] : vector<16x16xf32> to vector<16xf32>
    %200 = vector.shape_cast %199 : vector<16xf32> to vector<16x1xf32>
    %cst_55 = arith.constant 4.000000e+00 : f32
    %201 = vector.broadcast %cst_55 : f32 to vector<16x1xf32>
    %202 = arith.mulf %200, %201 : vector<16x1xf32>
    %203 = tpu.reciprocal %202 {approx = true} : vector<16x1xf32> -> vector<16x1xf32>
    %204 = vector.broadcast %203 : vector<16x1xf32> to vector<16x16xf32>
    %205 = arith.mulf %198, %204 : vector<16x16xf32>
    %206 = arith.truncf %205 : vector<16x16xf32> to vector<16x16xbf16>
    %207 = vector.extract_strided_slice %133 {offsets = [0, 64], sizes = [16, 32], strides = [1, 1]} : vector<16x128xbf16> to vector<16x32xbf16>
    %cst_56 = arith.constant dense<0.000000e+00> : vector<16x32xf32>
    %208 = tpu.matmul %206, %207, %cst_56 {dimension_numbers = #tpu.dot_dimension_numbers<[1], [0], [0], [1], [0, 0, 1, 1], [], []>} : vector<16x16xbf16>, vector<16x32xbf16>, vector<16x32xf32> -> vector<16x32xf32>
    %209 = arith.addf %184, %208 : vector<16x32xf32>
    %210 = vector.extract_strided_slice %129 {offsets = [0, 3], sizes = [16, 1], strides = [1, 1]} : vector<16x4xf32> to vector<16x1xf32>
    %211 = vector.extract_strided_slice %132 {offsets = [3, 0], sizes = [1, 16], strides = [1, 1]} : vector<4x16xf32> to vector<1x16xf32>
    %212 = vector.broadcast %210 : vector<16x1xf32> to vector<16x16xf32>
    %213 = vector.broadcast %211 : vector<1x16xf32> to vector<16x16xf32>
    %214 = arith.addf %212, %213 : vector<16x16xf32>
    %cst_57 = arith.constant 2.000000e-01 : f32
    %215 = vector.broadcast %cst_57 : f32 to vector<16x16xf32>
    %216 = arith.mulf %215, %214 : vector<16x16xf32>
    %217 = arith.maximumf %214, %216 : vector<16x16xf32>
    %218 = arith.addf %217, %6 : vector<16x16xf32>
    %cst_58 = arith.constant dense<0xFF800000> : vector<16xf32>
    %219 = vector.multi_reduction <maximumf>, %218, %cst_58 [1] : vector<16x16xf32> to vector<16xf32>
    %220 = vector.shape_cast %219 : vector<16xf32> to vector<16x1xf32>
    %221 = vector.broadcast %220 : vector<16x1xf32> to vector<16x16xf32>
    %222 = arith.subf %218, %221 : vector<16x16xf32>
    %223 = math.exp %222 : vector<16x16xf32>
    %cst_59 = arith.constant dense<0.000000e+00> : vector<16xf32>
    %224 = vector.multi_reduction <add>, %223, %cst_59 [1] : vector<16x16xf32> to vector<16xf32>
    %225 = vector.shape_cast %224 : vector<16xf32> to vector<16x1xf32>
    %cst_60 = arith.constant 4.000000e+00 : f32
    %226 = vector.broadcast %cst_60 : f32 to vector<16x1xf32>
    %227 = arith.mulf %225, %226 : vector<16x1xf32>
    %228 = tpu.reciprocal %227 {approx = true} : vector<16x1xf32> -> vector<16x1xf32>
    %229 = vector.broadcast %228 : vector<16x1xf32> to vector<16x16xf32>
    %230 = arith.mulf %223, %229 : vector<16x16xf32>
    %231 = arith.truncf %230 : vector<16x16xf32> to vector<16x16xbf16>
    %232 = vector.extract_strided_slice %133 {offsets = [0, 96], sizes = [16, 32], strides = [1, 1]} : vector<16x128xbf16> to vector<16x32xbf16>
    %cst_61 = arith.constant dense<0.000000e+00> : vector<16x32xf32>
    %233 = tpu.matmul %231, %232, %cst_61 {dimension_numbers = #tpu.dot_dimension_numbers<[1], [0], [0], [1], [0, 0, 1, 1], [], []>} : vector<16x16xbf16>, vector<16x32xbf16>, vector<16x32xf32> -> vector<16x32xf32>
    %234 = arith.addf %209, %233 : vector<16x32xf32>
    %c0_62 = arith.constant 0 : index
    %c0_63 = arith.constant 0 : index
    %235 = vector.load %arg8[%c0_62, %c0_63] : memref<1x32xf32, #tpu.memory_space<vmem>>, vector<1x32xf32>
    %236 = vector.broadcast %235 : vector<1x32xf32> to vector<16x32xf32>
    %237 = arith.addf %234, %236 : vector<16x32xf32>
    %cst_64 = arith.constant 0.000000e+00 : f32
    %238 = vector.broadcast %cst_64 : f32 to vector<16x32xf32>
    %239 = arith.maximumf %237, %238 : vector<16x32xf32>
    %240 = arith.truncf %239 : vector<16x32xf32> to vector<16x32xbf16>
    %c0_65 = arith.constant 0 : index
    %c0_66 = arith.constant 0 : index
    %241 = vector.load %arg9[%c0_65, %c0_66] : memref<32x516xf32, #tpu.memory_space<vmem>>, vector<32x516xf32>
    %242 = arith.truncf %241 : vector<32x516xf32> to vector<32x516xbf16>
    %cst_67 = arith.constant dense<0.000000e+00> : vector<16x516xf32>
    %243 = tpu.matmul %240, %242, %cst_67 {dimension_numbers = #tpu.dot_dimension_numbers<[1], [0], [0], [1], [0, 0, 1, 1], [], []>} : vector<16x32xbf16>, vector<32x516xbf16>, vector<16x516xf32> -> vector<16x516xf32>
    %244 = vector.extract_strided_slice %243 {offsets = [0, 0], sizes = [16, 512], strides = [1, 1]} : vector<16x516xf32> to vector<16x512xf32>
    %245 = vector.extract_strided_slice %243 {offsets = [0, 512], sizes = [16, 4], strides = [1, 1]} : vector<16x516xf32> to vector<16x4xf32>
    %c0_68 = arith.constant 0 : index
    %c0_69 = arith.constant 0 : index
    %246 = vector.load %arg10[%c0_68, %c0_69] : memref<4x32xf32, #tpu.memory_space<vmem>>, vector<4x32xf32>
    %247 = arith.truncf %246 : vector<4x32xf32> to vector<4x32xbf16>
    %cst_70 = arith.constant dense<0.000000e+00> : vector<4x16xf32>
    %248 = tpu.matmul %247, %240, %cst_70 {dimension_numbers = #tpu.dot_dimension_numbers<[1], [1], [0], [0], [0, 0, 1, 0], [], []>} : vector<4x32xbf16>, vector<16x32xbf16>, vector<4x16xf32> -> vector<4x16xf32>
    %249 = arith.truncf %244 : vector<16x512xf32> to vector<16x512xbf16>
    %cst_71 = arith.constant 0.000000e+00 : f32
    %250 = vector.broadcast %cst_71 : f32 to vector<16x128xf32>
    %251 = vector.extract_strided_slice %245 {offsets = [0, 0], sizes = [16, 1], strides = [1, 1]} : vector<16x4xf32> to vector<16x1xf32>
    %252 = vector.extract_strided_slice %248 {offsets = [0, 0], sizes = [1, 16], strides = [1, 1]} : vector<4x16xf32> to vector<1x16xf32>
    %253 = vector.broadcast %251 : vector<16x1xf32> to vector<16x16xf32>
    %254 = vector.broadcast %252 : vector<1x16xf32> to vector<16x16xf32>
    %255 = arith.addf %253, %254 : vector<16x16xf32>
    %cst_72 = arith.constant 2.000000e-01 : f32
    %256 = vector.broadcast %cst_72 : f32 to vector<16x16xf32>
    %257 = arith.mulf %256, %255 : vector<16x16xf32>
    %258 = arith.maximumf %255, %257 : vector<16x16xf32>
    %259 = arith.addf %258, %6 : vector<16x16xf32>
    %cst_73 = arith.constant dense<0xFF800000> : vector<16xf32>
    %260 = vector.multi_reduction <maximumf>, %259, %cst_73 [1] : vector<16x16xf32> to vector<16xf32>
    %261 = vector.shape_cast %260 : vector<16xf32> to vector<16x1xf32>
    %262 = vector.broadcast %261 : vector<16x1xf32> to vector<16x16xf32>
    %263 = arith.subf %259, %262 : vector<16x16xf32>
    %264 = math.exp %263 : vector<16x16xf32>
    %cst_74 = arith.constant dense<0.000000e+00> : vector<16xf32>
    %265 = vector.multi_reduction <add>, %264, %cst_74 [1] : vector<16x16xf32> to vector<16xf32>
    %266 = vector.shape_cast %265 : vector<16xf32> to vector<16x1xf32>
    %cst_75 = arith.constant 4.000000e+00 : f32
    %267 = vector.broadcast %cst_75 : f32 to vector<16x1xf32>
    %268 = arith.mulf %266, %267 : vector<16x1xf32>
    %269 = tpu.reciprocal %268 {approx = true} : vector<16x1xf32> -> vector<16x1xf32>
    %270 = vector.broadcast %269 : vector<16x1xf32> to vector<16x16xf32>
    %271 = arith.mulf %264, %270 : vector<16x16xf32>
    %272 = arith.truncf %271 : vector<16x16xf32> to vector<16x16xbf16>
    %273 = vector.extract_strided_slice %249 {offsets = [0, 0], sizes = [16, 128], strides = [1, 1]} : vector<16x512xbf16> to vector<16x128xbf16>
    %cst_76 = arith.constant dense<0.000000e+00> : vector<16x128xf32>
    %274 = tpu.matmul %272, %273, %cst_76 {dimension_numbers = #tpu.dot_dimension_numbers<[1], [0], [0], [1], [0, 0, 1, 1], [], []>} : vector<16x16xbf16>, vector<16x128xbf16>, vector<16x128xf32> -> vector<16x128xf32>
    %275 = arith.addf %250, %274 : vector<16x128xf32>
    %276 = vector.extract_strided_slice %245 {offsets = [0, 1], sizes = [16, 1], strides = [1, 1]} : vector<16x4xf32> to vector<16x1xf32>
    %277 = vector.extract_strided_slice %248 {offsets = [1, 0], sizes = [1, 16], strides = [1, 1]} : vector<4x16xf32> to vector<1x16xf32>
    %278 = vector.broadcast %276 : vector<16x1xf32> to vector<16x16xf32>
    %279 = vector.broadcast %277 : vector<1x16xf32> to vector<16x16xf32>
    %280 = arith.addf %278, %279 : vector<16x16xf32>
    %cst_77 = arith.constant 2.000000e-01 : f32
    %281 = vector.broadcast %cst_77 : f32 to vector<16x16xf32>
    %282 = arith.mulf %281, %280 : vector<16x16xf32>
    %283 = arith.maximumf %280, %282 : vector<16x16xf32>
    %284 = arith.addf %283, %6 : vector<16x16xf32>
    %cst_78 = arith.constant dense<0xFF800000> : vector<16xf32>
    %285 = vector.multi_reduction <maximumf>, %284, %cst_78 [1] : vector<16x16xf32> to vector<16xf32>
    %286 = vector.shape_cast %285 : vector<16xf32> to vector<16x1xf32>
    %287 = vector.broadcast %286 : vector<16x1xf32> to vector<16x16xf32>
    %288 = arith.subf %284, %287 : vector<16x16xf32>
    %289 = math.exp %288 : vector<16x16xf32>
    %cst_79 = arith.constant dense<0.000000e+00> : vector<16xf32>
    %290 = vector.multi_reduction <add>, %289, %cst_79 [1] : vector<16x16xf32> to vector<16xf32>
    %291 = vector.shape_cast %290 : vector<16xf32> to vector<16x1xf32>
    %cst_80 = arith.constant 4.000000e+00 : f32
    %292 = vector.broadcast %cst_80 : f32 to vector<16x1xf32>
    %293 = arith.mulf %291, %292 : vector<16x1xf32>
    %294 = tpu.reciprocal %293 {approx = true} : vector<16x1xf32> -> vector<16x1xf32>
    %295 = vector.broadcast %294 : vector<16x1xf32> to vector<16x16xf32>
    %296 = arith.mulf %289, %295 : vector<16x16xf32>
    %297 = arith.truncf %296 : vector<16x16xf32> to vector<16x16xbf16>
    %298 = vector.extract_strided_slice %249 {offsets = [0, 128], sizes = [16, 128], strides = [1, 1]} : vector<16x512xbf16> to vector<16x128xbf16>
    %cst_81 = arith.constant dense<0.000000e+00> : vector<16x128xf32>
    %299 = tpu.matmul %297, %298, %cst_81 {dimension_numbers = #tpu.dot_dimension_numbers<[1], [0], [0], [1], [0, 0, 1, 1], [], []>} : vector<16x16xbf16>, vector<16x128xbf16>, vector<16x128xf32> -> vector<16x128xf32>
    %300 = arith.addf %275, %299 : vector<16x128xf32>
    %301 = vector.extract_strided_slice %245 {offsets = [0, 2], sizes = [16, 1], strides = [1, 1]} : vector<16x4xf32> to vector<16x1xf32>
    %302 = vector.extract_strided_slice %248 {offsets = [2, 0], sizes = [1, 16], strides = [1, 1]} : vector<4x16xf32> to vector<1x16xf32>
    %303 = vector.broadcast %301 : vector<16x1xf32> to vector<16x16xf32>
    %304 = vector.broadcast %302 : vector<1x16xf32> to vector<16x16xf32>
    %305 = arith.addf %303, %304 : vector<16x16xf32>
    %cst_82 = arith.constant 2.000000e-01 : f32
    %306 = vector.broadcast %cst_82 : f32 to vector<16x16xf32>
    %307 = arith.mulf %306, %305 : vector<16x16xf32>
    %308 = arith.maximumf %305, %307 : vector<16x16xf32>
    %309 = arith.addf %308, %6 : vector<16x16xf32>
    %cst_83 = arith.constant dense<0xFF800000> : vector<16xf32>
    %310 = vector.multi_reduction <maximumf>, %309, %cst_83 [1] : vector<16x16xf32> to vector<16xf32>
    %311 = vector.shape_cast %310 : vector<16xf32> to vector<16x1xf32>
    %312 = vector.broadcast %311 : vector<16x1xf32> to vector<16x16xf32>
    %313 = arith.subf %309, %312 : vector<16x16xf32>
    %314 = math.exp %313 : vector<16x16xf32>
    %cst_84 = arith.constant dense<0.000000e+00> : vector<16xf32>
    %315 = vector.multi_reduction <add>, %314, %cst_84 [1] : vector<16x16xf32> to vector<16xf32>
    %316 = vector.shape_cast %315 : vector<16xf32> to vector<16x1xf32>
    %cst_85 = arith.constant 4.000000e+00 : f32
    %317 = vector.broadcast %cst_85 : f32 to vector<16x1xf32>
    %318 = arith.mulf %316, %317 : vector<16x1xf32>
    %319 = tpu.reciprocal %318 {approx = true} : vector<16x1xf32> -> vector<16x1xf32>
    %320 = vector.broadcast %319 : vector<16x1xf32> to vector<16x16xf32>
    %321 = arith.mulf %314, %320 : vector<16x16xf32>
    %322 = arith.truncf %321 : vector<16x16xf32> to vector<16x16xbf16>
    %323 = vector.extract_strided_slice %249 {offsets = [0, 256], sizes = [16, 128], strides = [1, 1]} : vector<16x512xbf16> to vector<16x128xbf16>
    %cst_86 = arith.constant dense<0.000000e+00> : vector<16x128xf32>
    %324 = tpu.matmul %322, %323, %cst_86 {dimension_numbers = #tpu.dot_dimension_numbers<[1], [0], [0], [1], [0, 0, 1, 1], [], []>} : vector<16x16xbf16>, vector<16x128xbf16>, vector<16x128xf32> -> vector<16x128xf32>
    %325 = arith.addf %300, %324 : vector<16x128xf32>
    %326 = vector.extract_strided_slice %245 {offsets = [0, 3], sizes = [16, 1], strides = [1, 1]} : vector<16x4xf32> to vector<16x1xf32>
    %327 = vector.extract_strided_slice %248 {offsets = [3, 0], sizes = [1, 16], strides = [1, 1]} : vector<4x16xf32> to vector<1x16xf32>
    %328 = vector.broadcast %326 : vector<16x1xf32> to vector<16x16xf32>
    %329 = vector.broadcast %327 : vector<1x16xf32> to vector<16x16xf32>
    %330 = arith.addf %328, %329 : vector<16x16xf32>
    %cst_87 = arith.constant 2.000000e-01 : f32
    %331 = vector.broadcast %cst_87 : f32 to vector<16x16xf32>
    %332 = arith.mulf %331, %330 : vector<16x16xf32>
    %333 = arith.maximumf %330, %332 : vector<16x16xf32>
    %334 = arith.addf %333, %6 : vector<16x16xf32>
    %cst_88 = arith.constant dense<0xFF800000> : vector<16xf32>
    %335 = vector.multi_reduction <maximumf>, %334, %cst_88 [1] : vector<16x16xf32> to vector<16xf32>
    %336 = vector.shape_cast %335 : vector<16xf32> to vector<16x1xf32>
    %337 = vector.broadcast %336 : vector<16x1xf32> to vector<16x16xf32>
    %338 = arith.subf %334, %337 : vector<16x16xf32>
    %339 = math.exp %338 : vector<16x16xf32>
    %cst_89 = arith.constant dense<0.000000e+00> : vector<16xf32>
    %340 = vector.multi_reduction <add>, %339, %cst_89 [1] : vector<16x16xf32> to vector<16xf32>
    %341 = vector.shape_cast %340 : vector<16xf32> to vector<16x1xf32>
    %cst_90 = arith.constant 4.000000e+00 : f32
    %342 = vector.broadcast %cst_90 : f32 to vector<16x1xf32>
    %343 = arith.mulf %341, %342 : vector<16x1xf32>
    %344 = tpu.reciprocal %343 {approx = true} : vector<16x1xf32> -> vector<16x1xf32>
    %345 = vector.broadcast %344 : vector<16x1xf32> to vector<16x16xf32>
    %346 = arith.mulf %339, %345 : vector<16x16xf32>
    %347 = arith.truncf %346 : vector<16x16xf32> to vector<16x16xbf16>
    %348 = vector.extract_strided_slice %249 {offsets = [0, 384], sizes = [16, 128], strides = [1, 1]} : vector<16x512xbf16> to vector<16x128xbf16>
    %cst_91 = arith.constant dense<0.000000e+00> : vector<16x128xf32>
    %349 = tpu.matmul %347, %348, %cst_91 {dimension_numbers = #tpu.dot_dimension_numbers<[1], [0], [0], [1], [0, 0, 1, 1], [], []>} : vector<16x16xbf16>, vector<16x128xbf16>, vector<16x128xf32> -> vector<16x128xf32>
    %350 = arith.addf %325, %349 : vector<16x128xf32>
    %c0_92 = arith.constant 0 : index
    %c0_93 = arith.constant 0 : index
    %351 = vector.load %arg11[%c0_92, %c0_93] : memref<1x128xf32, #tpu.memory_space<vmem>>, vector<1x128xf32>
    %352 = vector.broadcast %351 : vector<1x128xf32> to vector<16x128xf32>
    %353 = arith.addf %350, %352 : vector<16x128xf32>
    %cst_94 = arith.constant 0.000000e+00 : f32
    %354 = vector.broadcast %cst_94 : f32 to vector<16x128xf32>
    %355 = arith.maximumf %353, %354 : vector<16x128xf32>
    %356 = tpu.iota {dimensions = array<i32: 1>} : vector<16x128xi32>
    %c4_i32 = arith.constant 4 : i32
    %357 = vector.broadcast %c4_i32 : i32 to vector<16x128xi32>
    %358 = arith.cmpi slt, %356, %357 : vector<16x128xi32>
    %cst_95 = arith.constant -1.000000e+30 : f32
    %359 = vector.broadcast %cst_95 : f32 to vector<16x128xf32>
    %360 = arith.select %358, %355, %359 : vector<16x128xi1>, vector<16x128xf32>
    %cst_96 = arith.constant dense<0xFF800000> : vector<16xf32>
    %361 = vector.multi_reduction <maximumf>, %360, %cst_96 [1] : vector<16x128xf32> to vector<16xf32>
    %362 = vector.shape_cast %361 : vector<16xf32> to vector<16x1xf32>
    %363 = vector.broadcast %362 : vector<16x1xf32> to vector<16x128xf32>
    %364 = arith.subf %360, %363 : vector<16x128xf32>
    %365 = math.exp %364 : vector<16x128xf32>
    %cst_97 = arith.constant dense<0.000000e+00> : vector<16xf32>
    %366 = vector.multi_reduction <add>, %365, %cst_97 [1] : vector<16x128xf32> to vector<16xf32>
    %367 = vector.shape_cast %366 : vector<16xf32> to vector<16x1xf32>
    %368 = math.log %367 : vector<16x1xf32>
    %369 = vector.broadcast %362 : vector<16x1xf32> to vector<16x128xf32>
    %370 = arith.subf %360, %369 : vector<16x128xf32>
    %371 = vector.broadcast %368 : vector<16x1xf32> to vector<16x128xf32>
    %372 = arith.subf %370, %371 : vector<16x128xf32>
    %cst_98 = arith.constant 0.000000e+00 : f32
    %373 = vector.broadcast %cst_98 : f32 to vector<16x128xf32>
    %374 = arith.select %358, %372, %373 : vector<16x128xi1>, vector<16x128xf32>
    %c0_99 = arith.constant 0 : index
    %c0_100 = arith.constant 0 : index
    %375 = vector.load %arg12[%c0_99, %c0_100] : memref<16x128xf32, #tpu.memory_space<vmem>>, vector<16x128xf32>
    tpu.vector_store %arg12[%c0_99, %c0_100], %374 {strides = array<i32>} : memref<16x128xf32, #tpu.memory_space<vmem>>, vector<16x128xf32>,
    return
  }
  func.func @transform_0(%arg0: i32) -> (i32, i32) {
    %c0_i32 = arith.constant 0 : i32
    %c0_i32_0 = arith.constant 0 : i32
    %c0_i32_1 = arith.constant 0 : i32
    return %c0_i32, %c0_i32_0 : i32, i32
  }
  func.func @transform_1(%arg0: i32) -> (i32, i32) {
    %c0_i32 = arith.constant 0 : i32
    %c0_i32_0 = arith.constant 0 : i32
    %c0_i32_1 = arith.constant 0 : i32
    return %c0_i32, %c0_i32_0 : i32, i32
  }
  func.func @transform_2(%arg0: i32) -> (i32, i32) {
    %c0_i32 = arith.constant 0 : i32
    %c0_i32_0 = arith.constant 0 : i32
    %c0_i32_1 = arith.constant 0 : i32
    return %c0_i32, %c0_i32_0 : i32, i32
  }
  func.func @transform_3(%arg0: i32) -> (i32, i32) {
    %c0_i32 = arith.constant 0 : i32
    %c0_i32_0 = arith.constant 0 : i32
    %c0_i32_1 = arith.constant 0 : i32
    return %c0_i32, %c0_i32_0 : i32, i32
  }
  func.func @transform_4(%arg0: i32) -> (i32, i32) {
    %c0_i32 = arith.constant 0 : i32
    %c0_i32_0 = arith.constant 0 : i32
    %c0_i32_1 = arith.constant 0 : i32
    return %c0_i32, %c0_i32_0 : i32, i32
  }
  func.func @transform_5(%arg0: i32) -> (i32, i32) {
    %c0_i32 = arith.constant 0 : i32
    %c0_i32_0 = arith.constant 0 : i32
    %c0_i32_1 = arith.constant 0 : i32
    return %c0_i32, %c0_i32_0 : i32, i32
  }
  func.func @transform_6(%arg0: i32) -> (i32, i32) {
    %c0_i32 = arith.constant 0 : i32
    %c0_i32_0 = arith.constant 0 : i32
    %c0_i32_1 = arith.constant 0 : i32
    return %c0_i32, %c0_i32_0 : i32, i32
  }
  func.func @transform_7(%arg0: i32) -> (i32, i32) {
    %c0_i32 = arith.constant 0 : i32
    %c0_i32_0 = arith.constant 0 : i32
    %c0_i32_1 = arith.constant 0 : i32
    return %c0_i32, %c0_i32_0 : i32, i32
  }
  func.func @transform_8(%arg0: i32) -> (i32, i32) {
    %c0_i32 = arith.constant 0 : i32
    %c0_i32_0 = arith.constant 0 : i32
    %c0_i32_1 = arith.constant 0 : i32
    return %c0_i32, %c0_i32_0 : i32, i32
  }
  func.func @transform_9(%arg0: i32) -> (i32, i32) {
    %c0_i32 = arith.constant 0 : i32
    %c0_i32_0 = arith.constant 0 : i32
    %c0_i32_1 = arith.constant 0 : i32
    return %c0_i32, %c0_i32_0 : i32, i32
  }
  func.func @transform_10(%arg0: i32) -> (i32, i32) {
    %c0_i32 = arith.constant 0 : i32
    %c0_i32_0 = arith.constant 0 : i32
    %c0_i32_1 = arith.constant 0 : i32
    return %c0_i32, %c0_i32_0 : i32, i32
  }
  func.func @transform_11(%arg0: i32) -> (i32, i32) {
    %c0_i32 = arith.constant 0 : i32
    %c0_i32_0 = arith.constant 0 : i32
    %c0_i32_1 = arith.constant 0 : i32
    return %c0_i32, %c0_i32_0 : i32, i32
  }
}

</mosaic_0001>

<bundles_post_ra>
// kernel: tpu_custom_call.1
= control target key start
LH: loop header
LB: loop body
LE: loop exit
PB: predicated region body
PF: predicated region fallthrough
CT: control target
= control target key end

     0   :  { %16 = vsyncpa [#allocation3], 0  ;;  %s2451_s0 = inlined_call_operand.vmem [shape: f32[16,8], index: 0, kind: input, shape index: {}]   ;;  %s2452_s1 = inlined_call_operand.vmem [shape: s8[16,16], index: 1, kind: input, shape index: {}]   ;;  %s2453_s2 = inlined_call_operand.vmem [shape: f32[8,132], index: 2, kind: input, shape index: {}]   ;;  %s2454_s3 = inlined_call_operand.vmem [shape: f32[4,8], index: 3, kind: input, shape index: {}]   ;;  %s2455_s4 = inlined_call_operand.vmem [shape: f32[1,32], index: 4, kind: input, shape index: {}]   ;;  %s2456_s5 = inlined_call_operand.hbm [shape: f32[32,132], index: 5, kind: input, shape index: {}]   ;;  %s2457_s6 = inlined_call_operand.vmem [shape: f32[4,32], index: 6, kind: input, shape index: {}]   ;;  %s2458_s7 = inlined_call_operand.vmem [shape: f32[1,32], index: 7, kind: input, shape index: {}]   ;;  %s2459_s8 = inlined_call_operand.hbm [shape: f32[32,516], index: 8, kind: input, shape index: {}]   ;;  %s2460_s9 = inlined_call_operand.vmem [shape: f32[4,32], index: 9, kind: input, shape index: {}]   ;;  %s2461_s10 = inlined_call_operand.vmem [shape: f32[1,128], index: 10, kind: input, shape index: {}]   ;;  %s2462_s11 = inlined_call_operand.hbm [shape: f32[16,128], index: 11, kind: output, shape index: {}]  }
   0x1   :  { %17 = vsyncpa [#allocation6], 0 }
   0x2   :  { %18 = vsyncpa [#allocation4], 0  ;;  %s2062_s17 = smov [#allocation2]   ;;  %s1990_s21 = scalar_lea.hbm %s2456_s5, 1024 }
   0x3   :  { %s34_s18 = sshll.u32 %s2062_s17, 4  ;;  %p1991_p0 = scmp.ne.s32.totalorder %s2456_s5, %s1990_s21  ;;  %s35_s18 = int_to_ptr.vmem [resolvable:$true] %s34_s18 }
   0x4   :  { %p1994_p1 = scmp.lt.u32.totalorder %s1990_s21, %s2456_s5 }
   0x6   :  { %p1996_p2 = pnand %p1994_p1, %p1991_p0 }
   0x8   :  { %1999 = shalt.err (!%p1996_p2)
}
   0x9   :  { %s2000_s26 = scalar_lea.vmem %s35_s18, 1024  ;;  %p2005_p4 = scmp.lt.s32.totalorder %s35_s18, %s35_s18 }
   0xa   :  { %p2001_p3 = scmp.ne.s32.totalorder %s35_s18, %s2000_s26  ;;  %p2006_p5 = scmp.lt.s32.totalorder %s2000_s26, %s2000_s26 }
   0xc   :  { %p2007_p6 = por %p2006_p5, %p2005_p4 }
   0xe   :  { %p2008_p7 = pnand %p2007_p6, %p2001_p3 }
  0x10   :  { %2011 = shalt.err (!%p2008_p7)
}
  0x11   :  { %s2063_s27 = smov 256   ;;  %s2064_s28 = smov 16  }
  0x12   :  { %40 = dma.hbm_to_vmem [thread:$0]  %s2456_s5, 1024, %s35_s18, [#allocation3], %s2063_s27, %s2063_s27, %s2064_s28  }
  0x13   :  { %s2065_s12 = smov [#allocation5]   ;;  %s2012_s16 = scalar_lea.hbm %s2459_s8, 2560 }
  0x14   :  { %s50_s13 = sshll.u32 %s2065_s12, 4  ;;  %p2013_p8 = scmp.ne.s32.totalorder %s2459_s8, %s2012_s16  ;;  %s51_s13 = int_to_ptr.vmem [resolvable:$true] %s50_s13 }
  0x15   :  { %p2016_p9 = scmp.lt.u32.totalorder %s2012_s16, %s2459_s8 }
  0x17   :  { %p2018_p10 = pnand %p2016_p9, %p2013_p8 }
  0x19   :  { %2021 = shalt.err (!%p2018_p10)
}
  0x1a   :  { %s2022_s22 = scalar_lea.vmem %s51_s13, 2560  ;;  %p2027_p12 = scmp.lt.s32.totalorder %s51_s13, %s51_s13 }
  0x1b   :  { %p2023_p11 = scmp.ne.s32.totalorder %s51_s13, %s2022_s22  ;;  %p2028_p13 = scmp.lt.s32.totalorder %s2022_s22, %s2022_s22 }
  0x1d   :  { %p2029_p0 = por %p2028_p13, %p2027_p12 }
  0x1f   :  { %p2030_p1 = pnand %p2029_p0, %p2023_p11 }
  0x21   :  { %2033 = shalt.err (!%p2030_p1)
}
  0x22   :  { %s2066_s5 = smov 640   ;;  %s2067_s18 = smov 40  }
  0x23   :  { %56 = dma.hbm_to_vmem [thread:$0]  %s2459_s8, 2560, %s51_s13, [#allocation6], %s2066_s5, %s2066_s5, %s2067_s18  }
  0x24   :  { %2056 = dma.done.wait [#allocation3], 1024  }
  0x25   :  { %2057 = vsyncadd [#allocation3], 4294966272 }
  0x26   :  { %2058 = dma.done.wait [#allocation6], 2560  }
  0x27   :  { %2059 = vsyncadd [#allocation6], 4294964736  ;;  %v2068_v0 = vmov 0   ;;  %v2069_v1 = vmov 0.0   ;;  %vm2070_vm0 = vmmov 0   ;;  %v82_v2 = vld [vmem:[%s2453_s2 + $0x8] sm:$0xff]  ;;  %v195_v25 = vlaneseq }
  0x28   :  { %128 = vmatprep.mubr.bf16.mxu0 %v2068_v0  ;;  %1749 = vmatprep.subr.bf16.mxu1 %v2069_v1  ;;  %vm89_vm1 = vcmask 1043456   ;;  %v81_v3 = vld [vmem:[%s2453_s2] sm:$0xff]  ;;  %v84_v5 = vpack.c.bf16 %v82_v2, %v82_v2  ;;  %v79_v7 = vld [vmem:[%s2451_s0 + $0x8] sm:$0xff]  ;;  %vm85_vm2 = vcmask 64512   ;;  %v2071_v13 = vmov 1   ;;  %s2077_s15 = smov 64  }
  0x29   :  { %1751 = vmatprep.mubr.msk.bf16.mxu1 %vm2070_vm0, %v2069_v1  ;;  %1867 = vset.pattern.permute.xlu1 %v2068_v0  ;;  %v78_v4 = vld [vmem:[%s2451_s0] sm:$0xff]  ;;  %v83_v6 = vpack.c.bf16 %v81_v3, %v81_v3  ;;  %v2072_v23 = vmov 2   ;;  %v2073_v24 = vmov 3   ;;  %v196_v26 = vshrl.u32 %v195_v25, 7 }
  0x2a   :  { %v80_v8 = vpack.c.bf16 %v79_v7, %v78_v4  ;;  %1688 = vmatprep.subr.msk.bf16.mxu0 %vm89_vm1, %v84_v5  ;;  %v139_v11 = vld [vmem:[%s2454_s3] sm:$0xf]  ;;  %1866 = vset.pattern.permute.xlu0 %v2071_v13  ;;  %v2074_v45 = vmov -1e+30   ;;  %vm207_vm5 = vcmask 130048   ;;  %s2076_s3 = smov 32  }
  0x2b   :  { %v91_v9 = vsel %vm89_vm1, %v83_v6, 0  ;;  %v140_v12 = vpack.c.bf16 %v139_v11, %v139_v11  ;;  %v1713_v27 = vld [vmem:[%s2452_s1] sm:$0xf]   ;;  %v2208_v28 = vsub.s32 0, %v196_v26  ;;  %v2210_v29 = vsub.s32 1, %v196_v26  ;;  %s2075_s1 = smov 96  }
  0x2c   :  { %97 = vmatpush1.bf16.msra.mxu0 %v91_v9  ;;  %v87_v10 = vsel %vm85_vm2, %v80_v8, 0  ;;  %v1714_v30 = vunpack.c.0.s8 %v1713_v27  ;;  %v1715_v31 = vunpack.c.1.s8 %v1713_v27  ;;  %v2216_v44 = vsub.s32 2, %v196_v26 }
  0x2d   :  { %1750 = vmatpush3.bf16.xpose.msra.mxu1 %v87_v10  ;;  %1755 = vmatprep.subr.bf16.mxu0 %v2069_v1  ;;  %v2223_v55 = vsub.s32 3, %v196_v26  ;;  %vm582_vm6 = vcmask 261120  }
  0x2e   :  { %1761 = vmatprep.subr.bf16.mxu1 %v2069_v1  ;;  %v72_v34 = vcvt.s32.f32 %v1714_v30  ;;  %v73_v37 = vcvt.s32.f32 %v1715_v31 }
  0x2f   :  { %1689 = vmatmul.mubr.msk.bf16.vlgmr.msra.gmra.mrb[0].mxu0 %vm85_vm2, %v80_v8 }
  0x30   :  { %1757 = vmatprep.mubr.msk.bf16.mxu0 %vm2070_vm0, %v2069_v1  ;;  %vm74_vm3 = vcmp.gt.f32.partialorder %v72_v34, 0.0  ;;  %vm75_vm4 = vcmp.gt.f32.partialorder %v73_v37, 0.0 }
  0x31   :  { %v2218_v46 = vsel %vm74_vm3, 0.0, %v2074_v45  ;;  %v2225_v56 = vsel %vm75_vm4, 0.0, %v2074_v45 }
  0x34   :  { %1752 = vmatmul.mubr.msk.bf16.vlgmr.msra.gmra.mrb[0].mxu1 %vm85_vm2, %v140_v12 }
  0x35   :  { %1763 = vmatprep.mubr.msk.bf16.mxu1 %vm2070_vm0, %v2069_v1 }
 0x102   :  { %v130_v14 = vpop.f32.mrb[0].mxu0 }
 0x103   :  { %v132_v15 = vpop.f32.mrb[1].mxu0 }
 0x104   :  { %187 = vperm.xlu1 %1867, %v132_v15   ;;  %234 = vperm.xlu0 %1866, %v132_v15   ;;  %v134_v16 = vpop.f32.mrb[2].mxu0 }
 0x105   :  { %v2192_v17 = vpack.c.bf16 %v134_v16, %v130_v14  ;;  %v136_v18 = vpop.f32.mrb[3].mxu0 }
 0x107   :  { %1762 = vmatpush3.bf16.msra.mxu1 %v2192_v17  ;;  %v2195_v19 = vpop.f32.mrb[0].mxu1 }
 0x108   :  { %192 = vperm.xlu1 %1867, %v136_v18   ;;  %238 = vperm.xlu0 %1866, %v136_v18   ;;  %v1753_v20 = vpop.f32.mrb[1].mxu1  ;;  %v198_v32 = vrot.slane %v2195_v19, %v2208_v28  ;;  %v244_v33 = vrot.slane %v2195_v19, %v2210_v29  ;;  %v381_v54 = vrot.slane %v2195_v19, %v2216_v44 }
 0x109   :  { %v181_v21 = vpop.f32.mrb[2].mxu1  ;;  %1773 = vmatprep.subr.bf16.mxu1 %v2069_v1  ;;  %v475_v6 = vrot.slane %v2195_v19, %v2223_v55 }
 0x10a   :  { %v1754_v22 = vpop.f32.mrb[3].mxu1 }
 0x10c   :  { %1869 = vset.pattern.permute.xlu1 %v2072_v23  ;;  %1868 = vset.pattern.permute.xlu0 %v2072_v23 }
 0x10d   :  { %375 = vperm.xlu1 %1869, %v136_v18   ;;  %371 = vperm.xlu0 %1868, %v132_v15  }
 0x111   :  { %1870 = vset.pattern.permute.xlu1 %v2073_v24  ;;  %1871 = vset.pattern.permute.xlu0 %v2073_v24 }
 0x112   :  { %465 = vperm.xlu1 %1870, %v132_v15   ;;  %469 = vperm.xlu0 %1871, %v136_v18  }
 0x116   :  { %1872 = vset.pattern.permute.xlu1 %v2071_v13  ;;  %1874 = vset.pattern.permute.xlu0 %v2071_v13 }
 0x183   :  { %v188_v35 = vpop.permute.xlu1 %187  ;;  %v235_v36 = vpop.permute.xlu0 %234 }
 0x184   :  { %v199_v38 = vadd.f32 %v198_v32, %v188_v35  ;;  %v245_v39 = vadd.f32 %v244_v33, %v235_v36 }
 0x186   :  { %v201_v40 = vmul.f32 0.2, %v199_v38  ;;  %v247_v41 = vmul.f32 0.2, %v245_v39 }
 0x187   :  { %v193_v42 = vpop.permute.xlu1 %192  ;;  %v239_v43 = vpop.permute.xlu0 %238 }
 0x188   :  { %v203_v47 = vmax.f32 %v199_v38, %v201_v40  ;;  %v249_v48 = vmax.f32 %v245_v39, %v247_v41  ;;  %v200_v49 = vadd.f32 %v198_v32, %v193_v42  ;;  %v246_v50 = vadd.f32 %v244_v33, %v239_v43 }
 0x18a   :  { %v202_v51 = vmul.f32 0.2, %v200_v49  ;;  %v248_v52 = vmul.f32 0.2, %v246_v50  ;;  %v251_v53 = vadd.f32 %v249_v48, %v2218_v46  ;;  %v205_v62 = vadd.f32 %v203_v47, %v2218_v46 }
 0x18c   :  { %v204_v57 = vmax.f32 %v200_v49, %v202_v51  ;;  %v250_v58 = vmax.f32 %v246_v50, %v248_v52  ;;  %v376_v59 = vpop.permute.xlu1 %375  ;;  %v372_v60 = vpop.permute.xlu0 %371  ;;  %v253_v61 = vsel %vm207_vm5, %v251_v53, -inf  ;;  %v208_v8 = vsel %vm207_vm5, %v205_v62, -inf }
 0x18d   :  { %v383_v63 = vadd.f32 %v381_v54, %v376_v59  ;;  %v382_v2 = vadd.f32 %v381_v54, %v372_v60  ;;  %254 = vmax.xlane.f32.xlu1 %v253_v61 }
 0x18e   :  { %v252_v3 = vadd.f32 %v250_v58, %v2225_v56  ;;  %v206_v9 = vadd.f32 %v204_v57, %v2225_v56 }
 0x18f   :  { %v385_v4 = vmul.f32 0.2, %v383_v63  ;;  %v384_v5 = vmul.f32 0.2, %v382_v2 }
 0x190   :  { %v256_v7 = vsel %vm207_vm5, %v252_v3, -inf  ;;  %v211_v19 = vsel %vm207_vm5, %v206_v9, -inf }
 0x191   :  { %v387_v10 = vmax.f32 %v383_v63, %v385_v4  ;;  %v386_v11 = vmax.f32 %v382_v2, %v384_v5  ;;  %v466_v12 = vpop.permute.xlu1 %465  ;;  %v470_v14 = vpop.permute.xlu0 %469  ;;  %257 = vmax.xlane.f32.xlu0 %v256_v7  ;;  %209 = vmax.xlane.f32.xlu1 %v208_v8 }
 0x192   :  { %v476_v15 = vadd.f32 %v475_v6, %v466_v12  ;;  %v477_v16 = vadd.f32 %v475_v6, %v470_v14 }
 0x193   :  { %v388_v18 = vadd.f32 %v386_v11, %v2218_v46  ;;  %v389_v22 = vadd.f32 %v387_v10, %v2225_v56 }
 0x194   :  { %v478_v20 = vmul.f32 0.2, %v476_v15  ;;  %v479_v21 = vmul.f32 0.2, %v477_v16 }
 0x195   :  { %212 = vmax.xlane.f32.xlu0 %v211_v19  ;;  %v390_v26 = vsel %vm207_vm5, %v388_v18, -inf  ;;  %v393_v31 = vsel %vm207_vm5, %v389_v22, -inf }
 0x196   :  { %v480_v27 = vmax.f32 %v476_v15, %v478_v20  ;;  %v481_v30 = vmax.f32 %v477_v16, %v479_v21  ;;  %391 = vmax.xlane.f32.xlu1 %v390_v26 }
 0x198   :  { %v482_v32 = vadd.f32 %v480_v27, %v2218_v46  ;;  %v483_v33 = vadd.f32 %v481_v30, %v2225_v56 }
 0x199   :  { %394 = vmax.xlane.f32.xlu0 %v393_v31 }
 0x19a   :  { %v484_v34 = vsel %vm207_vm5, %v482_v32, -inf  ;;  %v487_v35 = vsel %vm207_vm5, %v483_v33, -inf }
 0x19b   :  { %485 = vmax.xlane.f32.xlu1 %v484_v34 }
 0x19d   :  { %488 = vmax.xlane.f32.xlu0 %v487_v35 }
 0x1ac   :  { %279 = vrot.lane.b32.xlu1 %v2192_v17, %s2075_s1 }
 0x21a   :  { %v255_v36 = vpop.xlane.xlu1 %254 }
 0x21b   :  { %v259_v37 = vsub.f32 %v251_v53, %v255_v36 }
 0x21d   :  { %v261_v38 = vmul.f32 1.442695, %v259_v37 }
 0x21e   :  { %v258_v39 = vpop.xlane.xlu0 %257  ;;  %v210_v40 = vpop.xlane.xlu1 %209 }
 0x21f   :  { %1886 = vpow2.f32 %v261_v38  ;;  %v260_v41 = vsub.f32 %v252_v3, %v258_v39  ;;  %v214_v42 = vsub.f32 %v205_v62, %v210_v40 }
 0x221   :  { %v263_v43 = vmul.f32 1.442695, %v260_v41  ;;  %v216_v45 = vmul.f32 1.442695, %v214_v42 }
 0x222   :  { %v213_v47 = vpop.xlane.xlu0 %212 }
 0x223   :  { %1888 = vpow2.f32 %v263_v43  ;;  %v215_v48 = vsub.f32 %v206_v9, %v213_v47  ;;  %v392_v49 = vpop.xlane.xlu1 %391 }
 0x224   :  { %1890 = vpow2.f32 %v216_v45  ;;  %v396_v50 = vsub.f32 %v388_v18, %v392_v49 }
 0x225   :  { %v218_v51 = vmul.f32 1.442695, %v215_v48 }
 0x226   :  { %v398_v52 = vmul.f32 1.442695, %v396_v50  ;;  %v395_v54 = vpop.xlane.xlu0 %394 }
 0x227   :  { %1892 = vpow2.f32 %v218_v51  ;;  %v397_v57 = vsub.f32 %v389_v22, %v395_v54 }
 0x228   :  { %1894 = vpow2.f32 %v398_v52  ;;  %v486_v53 = vpop.xlane.xlu1 %485 }
 0x229   :  { %v2246_v58 = vpop.eup %1886  ;;  %v400_v59 = vmul.f32 1.442695, %v397_v57  ;;  %v490_v60 = vsub.f32 %v482_v32, %v486_v53 }
 0x22a   :  { %v489_v61 = vpop.xlane.xlu0 %488  ;;  %v265_v62 = vsel %vm207_vm5, %v2246_v58, 0.0 }
 0x22b   :  { %1896 = vpow2.f32 %v400_v59  ;;  %v492_v63 = vmul.f32 1.442695, %v490_v60  ;;  %v491_v2 = vsub.f32 %v483_v33, %v489_v61  ;;  %266 = vadd.xlane.f32.xlu1 %v265_v62 }
 0x22c   :  { %v280_v3 = vpop.permute.xlu1 %279 }
 0x22d   :  { %v1889_v4 = vpop.eup %1888  ;;  %1898 = vpow2.f32 %v492_v63  ;;  %v494_v5 = vmul.f32 1.442695, %v491_v2  ;;  %1756 = vmatpush3.bf16.msra.mxu0 %v280_v3 }
 0x22e   :  { %v1891_v6 = vpop.eup %1890  ;;  %v268_v7 = vsel %vm207_vm5, %v1889_v4, 0.0  ;;  %1767 = vmatprep.subr.bf16.mxu0 %v2069_v1 }
 0x22f   :  { %1900 = vpow2.f32 %v494_v5  ;;  %269 = vadd.xlane.f32.xlu0 %v268_v7  ;;  %v220_v8 = vsel %vm207_vm5, %v1891_v6, 0.0  ;;  %v571_v5 = vld [vmem:[#allocation2 + $0x8] sm:$0xff] }
 0x230   :  { %221 = vadd.xlane.f32.xlu1 %v220_v8  ;;  %v570_v8 = vld [vmem:[#allocation2] sm:$0xff] }
 0x231   :  { %v1893_v9 = vpop.eup %1892 }
 0x232   :  { %v1895_v10 = vpop.eup %1894  ;;  %v223_v11 = vsel %vm207_vm5, %v1893_v9, 0.0 }
 0x233   :  { %224 = vadd.xlane.f32.xlu0 %v223_v11  ;;  %v402_v12 = vsel %vm207_vm5, %v1895_v10, 0.0  ;;  %v575_v11 = vld [vmem:[#allocation2 + $0x28] sm:$0xff] }
 0x234   :  { %403 = vadd.xlane.f32.xlu1 %v402_v12  ;;  %v577_v12 = vld [vmem:[#allocation2 + $0x38] sm:$0xff] }
 0x235   :  { %v1897_v14 = vpop.eup %1896 }
 0x236   :  { %v405_v15 = vsel %vm207_vm5, %v1897_v14, 0.0 }
 0x237   :  { %v1899_v16 = vpop.eup %1898  ;;  %406 = vadd.xlane.f32.xlu0 %v405_v15  ;;  %v574_v15 = vld [vmem:[#allocation2 + $0x20] sm:$0xff] }
 0x238   :  { %v496_v18 = vsel %vm207_vm5, %v1899_v16, 0.0 }
 0x239   :  { %v1901_v20 = vpop.eup %1900  ;;  %497 = vadd.xlane.f32.xlu1 %v496_v18 }
 0x23a   :  { %v499_v21 = vsel %vm207_vm5, %v1901_v20, 0.0 }
 0x23b   :  { %500 = vadd.xlane.f32.xlu0 %v499_v21 }
 0x24a   :  { %509 = vrot.lane.b32.xlu1 %v2192_v17, %s2076_s3 }
 0x251   :  { %415 = vrot.lane.b32.xlu0 %v2192_v17, %s2077_s15 }
 0x2b8   :  { %v267_v19 = vpop.xlane.xlu1 %266 }
 0x2b9   :  { %v271_v22 = vmul.f32 4.0, %v267_v19 }
 0x2bb   :  { %1902 = vrcp.f32 %v271_v22 }
 0x2bc   :  { %v270_v26 = vpop.xlane.xlu0 %269 }
 0x2bd   :  { %v272_v27 = vmul.f32 4.0, %v270_v26  ;;  %v222_v30 = vpop.xlane.xlu1 %221 }
 0x2be   :  { %v226_v31 = vmul.f32 4.0, %v222_v30 }
 0x2bf   :  { %1904 = vrcp.f32 %v272_v27 }
 0x2c0   :  { %v225_v32 = vpop.xlane.xlu0 %224  ;;  %1906 = vrcp.f32 %v226_v31 }
 0x2c1   :  { %v227_v33 = vmul.f32 4.0, %v225_v32  ;;  %v404_v34 = vpop.xlane.xlu1 %403 }
 0x2c2   :  { %v408_v35 = vmul.f32 4.0, %v404_v34 }
 0x2c3   :  { %1908 = vrcp.f32 %v227_v33 }
 0x2c4   :  { %v407_v36 = vpop.xlane.xlu0 %406  ;;  %1910 = vrcp.f32 %v408_v35 }
 0x2c5   :  { %v409_v37 = vmul.f32 4.0, %v407_v36  ;;  %v1903_v39 = vpop.eup %1902 }
 0x2c6   :  { %v498_v38 = vpop.xlane.xlu1 %497  ;;  %v275_v43 = vmul.f32 %v1903_v39, %v2246_v58 }
 0x2c7   :  { %1912 = vrcp.f32 %v409_v37  ;;  %v502_v17 = vmul.f32 4.0, %v498_v38 }
 0x2c8   :  { %v501_v40 = vpop.xlane.xlu0 %500 }
 0x2c9   :  { %v1905_v41 = vpop.eup %1904  ;;  %1914 = vrcp.f32 %v502_v17  ;;  %v503_v42 = vmul.f32 4.0, %v501_v40  ;;  %v1695_v40 = vld [vmem:[%s2455_s4] ss:$0 sm:$0xff] }
 0x2ca   :  { %v276_v45 = vmul.f32 %v1905_v41, %v1889_v4  ;;  %v1907_v47 = vpop.eup %1906  ;;  %v510_v58 = vpop.permute.xlu1 %509 }
 0x2cb   :  { %1916 = vrcp.f32 %v503_v42  ;;  %v230_v51 = vmul.f32 %v1907_v47, %v1891_v6  ;;  %v573_v6 = vld [vmem:[#allocation2 + $0x18] sm:$0xff] }
 0x2cc   :  { %v416_v48 = vpop.permute.xlu0 %415  ;;  %v277_v49 = vpack.c.bf16 %v276_v45, %v275_v43  ;;  %v579_v7 = vpack.c.bf16 %v573_v6, %v571_v5 }
 0x2cd   :  { %v1909_v50 = vpop.eup %1908 }
 0x2ce   :  { %v231_v52 = vmul.f32 %v1909_v50, %v1893_v9  ;;  %1758 = vmatmul.mubr.msk.bf16.vlgmr.msra.gmra.mrb[4].mxu0 %vm207_vm5, %v277_v49  ;;  %v1911_v54 = vpop.eup %1910  ;;  %v572_v9 = vld [vmem:[#allocation2 + $0x10] sm:$0xff] }
 0x2cf   :  { %1768 = vmatpush3.bf16.msra.mxu0 %v416_v48  ;;  %1769 = vmatprep.mubr.msk.bf16.mxu0 %vm2070_vm0, %v2069_v1  ;;  %v412_v59 = vmul.f32 %v1911_v54, %v1895_v10  ;;  %v578_v10 = vpack.c.bf16 %v572_v9, %v570_v8 }
 0x2d0   :  { %v232_v57 = vpack.c.bf16 %v231_v52, %v230_v51  ;;  %586 = vmatprep.subr.bf16.mxu0 %v579_v7 }
 0x2d1   :  { %v1913_v53 = vpop.eup %1912 }
 0x2d2   :  { %v413_v60 = vmul.f32 %v1913_v53, %v1897_v14  ;;  %1764 = vmatmul.mubr.msk.bf16.vlgmr.msra.gmra.mrb[4].mxu1 %vm207_vm5, %v232_v57  ;;  %v581_v14 = vpack.c.bf16 %v577_v12, %v575_v11  ;;  %v629_v57 = vld [vmem:[%s2457_s6] sm:$0xf] }
 0x2d3   :  { %v1915_v61 = vpop.eup %1914  ;;  %1774 = vmatpush3.bf16.msra.mxu1 %v510_v58  ;;  %1775 = vmatprep.mubr.msk.bf16.mxu1 %vm2070_vm0, %v2069_v1  ;;  %v630_v53 = vpack.c.bf16 %v629_v57, %v629_v57 }
 0x2d4   :  { %v414_v62 = vpack.c.bf16 %v413_v60, %v412_v59  ;;  %1779 = vmatprep.subr.bf16.mxu1 %v2069_v1  ;;  %v506_v2 = vmul.f32 %v1915_v61, %v1899_v16  ;;  %v576_v16 = vld [vmem:[#allocation2 + $0x30] sm:$0xff] }
 0x2d5   :  { %v1917_v63 = vpop.eup %1916  ;;  %v580_v18 = vpack.c.bf16 %v576_v16, %v574_v15 }
 0x2d6   :  { %v507_v3 = vmul.f32 %v1917_v63, %v1901_v20  ;;  %1770 = vmatmul.mubr.msk.bf16.vlgmr.msra.gmra.mrb[8].mxu0 %vm207_vm5, %v414_v62 }
 0x2d7   :  { %618 = vmatprep.mubr.bf16.mxu0 %v2068_v0  ;;  %587 = vmatpush1.bf16.msra.mxu0 %v578_v10 }
 0x2d8   :  { %v508_v4 = vpack.c.bf16 %v507_v3, %v506_v2  ;;  %588 = vmatprep.subr.bf16.mxu0 %v581_v14 }
 0x2da   :  { %1776 = vmatmul.mubr.msk.bf16.vlgmr.msra.gmra.mrb[8].mxu1 %vm207_vm5, %v508_v4 }
 0x2db   :  { %1781 = vmatprep.mubr.msk.bf16.mxu1 %vm2070_vm0, %v2069_v1  ;;  %589 = vmatpush1.bf16.msra.mxu0 %v580_v18 }
 0x2dc   :  { %1785 = vmatprep.subr.bf16.mxu0 %v2069_v1 }
 0x3a1   :  { %v319_v20 = vpop.f32.mrb[4].mxu0 }
 0x3a2   :  { %v1759_v21 = vpop.f32.mrb[5].mxu0 }
 0x3a3   :  { %v322_v19 = vpop.f32.mrb[6].mxu0 }
 0x3a4   :  { %v1760_v22 = vpop.f32.mrb[7].mxu0 }
 0x3a5   :  { %v363_v26 = vpop.f32.mrb[4].mxu1 }
 0x3a6   :  { %v364_v27 = vadd.f32 %v363_v26, %v319_v20  ;;  %v1765_v30 = vpop.f32.mrb[5].mxu1 }
 0x3a7   :  { %v366_v31 = vpop.f32.mrb[6].mxu1 }
 0x3a8   :  { %v367_v32 = vadd.f32 %v366_v31, %v322_v19  ;;  %v1766_v33 = vpop.f32.mrb[7].mxu1 }
 0x3a9   :  { %v455_v34 = vpop.f32.mrb[8].mxu0 }
 0x3aa   :  { %v462_v35 = vadd.f32 %v455_v34, %v364_v27  ;;  %v1771_v36 = vpop.f32.mrb[9].mxu0 }
 0x3ab   :  { %v458_v37 = vpop.f32.mrb[10].mxu0 }
 0x3ac   :  { %v463_v38 = vadd.f32 %v458_v37, %v367_v32  ;;  %v1772_v39 = vpop.f32.mrb[11].mxu0 }
 0x3ad   :  { %v549_v17 = vpop.f32.mrb[8].mxu1 }
 0x3ae   :  { %v556_v41 = vadd.f32 %v549_v17, %v462_v35  ;;  %v1777_v42 = vpop.f32.mrb[9].mxu1 }
 0x3af   :  { %v552_v43 = vpop.f32.mrb[10].mxu1 }
 0x3b0   :  { %v565_v45 = vadd.f32 %v1695_v40, %v556_v41  ;;  %v557_v47 = vadd.f32 %v552_v43, %v463_v38  ;;  %v1778_v48 = vpop.f32.mrb[11].mxu1 }
 0x3b2   :  { %v566_v49 = vadd.f32 %v1695_v40, %v557_v47  ;;  %v567_v50 = vmax.f32 %v565_v45, 0.0 }
 0x3b4   :  { %v568_v51 = vmax.f32 %v566_v49, 0.0 }
 0x3b6   :  { %v569_v52 = vpack.c.bf16 %v568_v51, %v567_v50 }
 0x3b8   :  { %1696 = vmatmul.mubr.msk.bf16.vlgmr.msra.gmra.mrb[12].mxu0 %vm582_vm6, %v569_v52  ;;  %v584_v54 = vsel %vm582_vm6, %v569_v52, 0 }
 0x3b9   :  { %1780 = vmatpush3.bf16.xpose.msra.mxu1 %v584_v54  ;;  %1787 = vmatprep.mubr.msk.bf16.mxu0 %vm2070_vm0, %v2069_v1 }
 0x3ba   :  { %1791 = vmatprep.subr.bf16.mxu1 %v2069_v1 }
 0x3c0   :  { %1782 = vmatmul.mubr.msk.bf16.vlgmr.msra.gmra.mrb[12].mxu1 %vm582_vm6, %v630_v53 }
 0x3c1   :  { %1793 = vmatprep.mubr.msk.bf16.mxu1 %vm2070_vm0, %v2069_v1 }
 0x48b   :  { %v620_v59 = vpop.f32.mrb[12].mxu0 }
 0x48c   :  { %v622_v60 = vpop.f32.mrb[13].mxu0 }
 0x48d   :  { %723 = vperm.xlu1 %1872, %v622_v60   ;;  %v624_v58 = vpop.f32.mrb[14].mxu0 }
 0x48e   :  { %v2290_v61 = vpack.c.bf16 %v624_v58, %v620_v59  ;;  %v626_v62 = vpop.f32.mrb[15].mxu0 }
 0x48f   :  { %727 = vperm.xlu0 %1874, %v626_v62  }
 0x490   :  { %1792 = vmatpush3.bf16.msra.mxu1 %v2290_v61 }
 0x491   :  { %1873 = vset.pattern.permute.xlu1 %v2068_v0  ;;  %1803 = vmatprep.subr.bf16.mxu1 %v2069_v1 }
 0x492   :  { %677 = vperm.xlu1 %1873, %v622_v60  }
 0x493   :  { %1875 = vset.pattern.permute.xlu0 %v2072_v23  ;;  %v668_v63 = vpop.f32.mrb[12].mxu1 }
 0x494   :  { %860 = vperm.xlu0 %1875, %v622_v60   ;;  %v1783_v2 = vpop.f32.mrb[13].mxu1  ;;  %v733_v5 = vrot.slane %v668_v63, %v2210_v29  ;;  %v688_v9 = vrot.slane %v668_v63, %v2208_v28  ;;  %v870_v12 = vrot.slane %v668_v63, %v2216_v44  ;;  %v964_v34 = vrot.slane %v668_v63, %v2223_v55 }
 0x495   :  { %v671_v3 = vpop.f32.mrb[14].mxu1 }
 0x496   :  { %682 = vperm.xlu1 %1873, %v626_v62   ;;  %v1784_v4 = vpop.f32.mrb[15].mxu1 }
 0x498   :  { %1878 = vset.pattern.permute.xlu0 %v2073_v24 }
 0x499   :  { %958 = vperm.xlu0 %1878, %v626_v62  }
 0x49a   :  { %1876 = vset.pattern.permute.xlu1 %v2072_v23 }
 0x49b   :  { %864 = vperm.xlu1 %1876, %v626_v62  }
 0x49d   :  { %1881 = vset.pattern.permute.xlu0 %v2071_v13 }
 0x49f   :  { %1877 = vset.pattern.permute.xlu1 %v2073_v24 }
 0x4a0   :  { %954 = vperm.xlu1 %1877, %v622_v60  }
 0x4a4   :  { %1879 = vset.pattern.permute.xlu1 %v2071_v13 }
 0x50c   :  { %v724_v6 = vpop.permute.xlu1 %723 }
 0x50d   :  { %v734_v7 = vadd.f32 %v733_v5, %v724_v6 }
 0x50e   :  { %v728_v8 = vpop.permute.xlu0 %727 }
 0x50f   :  { %v736_v10 = vmul.f32 0.2, %v734_v7  ;;  %v735_v11 = vadd.f32 %v733_v5, %v728_v8 }
 0x511   :  { %v738_v14 = vmax.f32 %v734_v7, %v736_v10  ;;  %v737_v15 = vmul.f32 0.2, %v735_v11  ;;  %v678_v16 = vpop.permute.xlu1 %677 }
 0x512   :  { %v689_v18 = vadd.f32 %v688_v9, %v678_v16 }
 0x513   :  { %v739_v20 = vmax.f32 %v735_v11, %v737_v15  ;;  %v861_v21 = vpop.permute.xlu0 %860  ;;  %v740_v19 = vadd.f32 %v738_v14, %v2218_v46 }
 0x514   :  { %v691_v13 = vmul.f32 0.2, %v689_v18  ;;  %v871_v22 = vadd.f32 %v870_v12, %v861_v21 }
 0x515   :  { %v683_v26 = vpop.permute.xlu1 %682  ;;  %v742_v27 = vsel %vm207_vm5, %v740_v19, -inf  ;;  %v741_v30 = vadd.f32 %v739_v20, %v2225_v56 }
 0x516   :  { %v693_v31 = vmax.f32 %v689_v18, %v691_v13  ;;  %v873_v32 = vmul.f32 0.2, %v871_v22  ;;  %v690_v33 = vadd.f32 %v688_v9, %v683_v26  ;;  %743 = vmax.xlane.f32.xlu1 %v742_v27 }
 0x517   :  { %v745_v35 = vsel %vm207_vm5, %v741_v30, -inf }
 0x518   :  { %v875_v36 = vmax.f32 %v871_v22, %v873_v32  ;;  %v692_v37 = vmul.f32 0.2, %v690_v33  ;;  %v959_v38 = vpop.permute.xlu0 %958  ;;  %746 = vmax.xlane.f32.xlu0 %v745_v35  ;;  %v695_v39 = vadd.f32 %v693_v31, %v2218_v46 }
 0x519   :  { %v966_v17 = vadd.f32 %v964_v34, %v959_v38 }
 0x51a   :  { %v694_v40 = vmax.f32 %v690_v33, %v692_v37  ;;  %v865_v41 = vpop.permute.xlu1 %864  ;;  %v697_v42 = vsel %vm207_vm5, %v695_v39, -inf  ;;  %v877_v43 = vadd.f32 %v875_v36, %v2218_v46 }
 0x51b   :  { %v968_v45 = vmul.f32 0.2, %v966_v17  ;;  %v872_v47 = vadd.f32 %v870_v12, %v865_v41  ;;  %698 = vmax.xlane.f32.xlu1 %v697_v42 }
 0x51c   :  { %v696_v48 = vadd.f32 %v694_v40, %v2225_v56  ;;  %v879_v51 = vsel %vm207_vm5, %v877_v43, -inf }
 0x51d   :  { %v874_v49 = vmul.f32 0.2, %v872_v47  ;;  %v970_v52 = vmax.f32 %v966_v17, %v968_v45 }
 0x51e   :  { %v700_v50 = vsel %vm207_vm5, %v696_v48, -inf }
 0x51f   :  { %v876_v54 = vmax.f32 %v872_v47, %v874_v49  ;;  %v955_v57 = vpop.permute.xlu1 %954  ;;  %701 = vmax.xlane.f32.xlu0 %v700_v50  ;;  %880 = vmax.xlane.f32.xlu1 %v879_v51  ;;  %v972_v62 = vadd.f32 %v970_v52, %v2225_v56 }
 0x520   :  { %v965_v53 = vadd.f32 %v964_v34, %v955_v57 }
 0x521   :  { %v878_v59 = vadd.f32 %v876_v54, %v2225_v56  ;;  %v976_v3 = vsel %vm207_vm5, %v972_v62, -inf }
 0x522   :  { %v967_v60 = vmul.f32 0.2, %v965_v53 }
 0x523   :  { %v882_v58 = vsel %vm207_vm5, %v878_v59, -inf }
 0x524   :  { %v969_v63 = vmax.f32 %v965_v53, %v967_v60  ;;  %883 = vmax.xlane.f32.xlu0 %v882_v58 }
 0x526   :  { %v971_v2 = vadd.f32 %v969_v63, %v2218_v46 }
 0x528   :  { %977 = vmax.xlane.f32.xlu0 %v976_v3  ;;  %v973_v4 = vsel %vm207_vm5, %v971_v2, -inf }
 0x529   :  { %974 = vmax.xlane.f32.xlu1 %v973_v4 }
 0x53a   :  { %768 = vrot.lane.b32.xlu1 %v2290_v61, %s2075_s1 }
 0x5a3   :  { %v744_v5 = vpop.xlane.xlu1 %743 }
 0x5a4   :  { %v748_v6 = vsub.f32 %v740_v19, %v744_v5 }
 0x5a5   :  { %v747_v7 = vpop.xlane.xlu0 %746 }
 0x5a6   :  { %v750_v8 = vmul.f32 1.442695, %v748_v6  ;;  %v749_v9 = vsub.f32 %v741_v30, %v747_v7 }
 0x5a8   :  { %1918 = vpow2.f32 %v750_v8  ;;  %v752_v10 = vmul.f32 1.442695, %v749_v9  ;;  %v699_v11 = vpop.xlane.xlu1 %698 }
 0x5a9   :  { %v703_v12 = vsub.f32 %v695_v39, %v699_v11 }
 0x5aa   :  { %1920 = vpow2.f32 %v752_v10 }
 0x5ab   :  { %v705_v14 = vmul.f32 1.442695, %v703_v12 }
 0x5ac   :  { %v702_v15 = vpop.xlane.xlu0 %701  ;;  %v881_v16 = vpop.xlane.xlu1 %880 }
 0x5ad   :  { %1922 = vpow2.f32 %v705_v14  ;;  %v704_v18 = vsub.f32 %v696_v48, %v702_v15  ;;  %v885_v20 = vsub.f32 %v877_v43, %v881_v16 }
 0x5af   :  { %v707_v21 = vmul.f32 1.442695, %v704_v18  ;;  %v887_v13 = vmul.f32 1.442695, %v885_v20 }
 0x5b1   :  { %1924 = vpow2.f32 %v707_v21  ;;  %v884_v22 = vpop.xlane.xlu0 %883 }
 0x5b2   :  { %v1919_v26 = vpop.eup %1918  ;;  %1926 = vpow2.f32 %v887_v13  ;;  %v886_v19 = vsub.f32 %v878_v59, %v884_v22 }
 0x5b3   :  { %v754_v27 = vsel %vm207_vm5, %v1919_v26, 0.0 }
 0x5b4   :  { %v1921_v30 = vpop.eup %1920  ;;  %v889_v31 = vmul.f32 1.442695, %v886_v19  ;;  %755 = vadd.xlane.f32.xlu1 %v754_v27 }
 0x5b5   :  { %v978_v32 = vpop.xlane.xlu0 %977  ;;  %v757_v33 = vsel %vm207_vm5, %v1921_v30, 0.0 }
 0x5b6   :  { %1928 = vpow2.f32 %v889_v31  ;;  %v980_v34 = vsub.f32 %v972_v62, %v978_v32  ;;  %758 = vadd.xlane.f32.xlu0 %v757_v33  ;;  %v975_v35 = vpop.xlane.xlu1 %974 }
 0x5b7   :  { %v1923_v36 = vpop.eup %1922  ;;  %v979_v37 = vsub.f32 %v971_v2, %v975_v35 }
 0x5b8   :  { %v983_v38 = vmul.f32 1.442695, %v980_v34  ;;  %v709_v39 = vsel %vm207_vm5, %v1923_v36, 0.0 }
 0x5b9   :  { %v981_v17 = vmul.f32 1.442695, %v979_v37  ;;  %710 = vadd.xlane.f32.xlu1 %v709_v39  ;;  %v1062_v37 = vld [vmem:[#allocation5 + $0x18] sm:$0xff] }
 0x5ba   :  { %1930 = vpow2.f32 %v983_v38  ;;  %v769_v40 = vpop.permute.xlu1 %768  ;;  %v1067_v38 = vld [vmem:[#allocation5 + $0x40] sm:$0xff] }
 0x5bb   :  { %v1925_v41 = vpop.eup %1924  ;;  %1932 = vpow2.f32 %v981_v17  ;;  %1786 = vmatpush3.bf16.msra.mxu0 %v769_v40  ;;  %v1082_v39 = vpack.c.bf16 %v1067_v38, %v1062_v37  ;;  %v1061_v17 = vld [vmem:[#allocation5 + $0x10] sm:$0xff]  ;;  %v1066_v40 = vld [vmem:[#allocation5 + $0x38] sm:$0xff] }
 0x5bc   :  { %v1927_v42 = vpop.eup %1926  ;;  %v712_v43 = vsel %vm207_vm5, %v1925_v41, 0.0  ;;  %1797 = vmatprep.subr.bf16.mxu0 %v2069_v1 }
 0x5bd   :  { %713 = vadd.xlane.f32.xlu0 %v712_v43  ;;  %v891_v45 = vsel %vm207_vm5, %v1927_v42, 0.0  ;;  %v1077_v43 = vld [vmem:[#allocation5 + $0x90] sm:$0xff] }
 0x5be   :  { %892 = vadd.xlane.f32.xlu1 %v891_v45  ;;  %v1060_v45 = vld [vmem:[#allocation5 + $0x8] sm:$0xff] }
 0x5c0   :  { %v1929_v47 = vpop.eup %1928 }
 0x5c1   :  { %v894_v48 = vsel %vm207_vm5, %v1929_v47, 0.0 }
 0x5c2   :  { %895 = vadd.xlane.f32.xlu0 %v894_v48 }
 0x5c4   :  { %v1931_v49 = vpop.eup %1930 }
 0x5c5   :  { %v1933_v50 = vpop.eup %1932  ;;  %v988_v51 = vsel %vm207_vm5, %v1931_v49, 0.0 }
 0x5c6   :  { %989 = vadd.xlane.f32.xlu0 %v988_v51  ;;  %v985_v52 = vsel %vm207_vm5, %v1933_v50, 0.0  ;;  %v1064_v51 = vld [vmem:[#allocation5 + $0x28] sm:$0xff] }
 0x5c7   :  { %986 = vadd.xlane.f32.xlu1 %v985_v52  ;;  %v1071_v52 = vld [vmem:[#allocation5 + $0x60] sm:$0xff] }
 0x5d8   :  { %998 = vrot.lane.b32.xlu1 %v2290_v61, %s2076_s3 }
 0x5dc   :  { %904 = vrot.lane.b32.xlu0 %v2290_v61, %s2077_s15 }
 0x641   :  { %v756_v54 = vpop.xlane.xlu1 %755 }
 0x642   :  { %v760_v57 = vmul.f32 4.0, %v756_v54 }
 0x643   :  { %v759_v53 = vpop.xlane.xlu0 %758 }
 0x644   :  { %1934 = vrcp.f32 %v760_v57  ;;  %v761_v59 = vmul.f32 4.0, %v759_v53  ;;  %v1076_v57 = vld [vmem:[#allocation5 + $0x88] sm:$0xff] }
 0x645   :  { %v1086_v53 = vpack.c.bf16 %v1076_v57, %v1071_v52 }
 0x646   :  { %1936 = vrcp.f32 %v761_v59  ;;  %v711_v60 = vpop.xlane.xlu1 %710  ;;  %v1070_v59 = vld [vmem:[#allocation5 + $0x58] sm:$0xff] }
 0x647   :  { %v715_v58 = vmul.f32 4.0, %v711_v60  ;;  %v1075_v60 = vld [vmem:[#allocation5 + $0x80] sm:$0xff] }
 0x649   :  { %1938 = vrcp.f32 %v715_v58  ;;  %v1085_v58 = vpack.c.bf16 %v1075_v60, %v1070_v59 }
 0x64a   :  { %v714_v62 = vpop.xlane.xlu0 %713 }
 0x64b   :  { %v716_v63 = vmul.f32 4.0, %v714_v62  ;;  %v893_v2 = vpop.xlane.xlu1 %892  ;;  %v1069_v62 = vld [vmem:[#allocation5 + $0x50] sm:$0xff] }
 0x64c   :  { %v897_v3 = vmul.f32 4.0, %v893_v2 }
 0x64d   :  { %1940 = vrcp.f32 %v716_v63  ;;  %v1074_v63 = vld [vmem:[#allocation5 + $0x78] sm:$0xff] }
 0x64e   :  { %v1935_v4 = vpop.eup %1934  ;;  %1942 = vrcp.f32 %v897_v3  ;;  %v1084_v2 = vpack.c.bf16 %v1074_v63, %v1069_v62 }
 0x64f   :  { %v896_v5 = vpop.xlane.xlu0 %895  ;;  %v764_v61 = vmul.f32 %v1935_v4, %v1919_v26 }
 0x650   :  { %v1937_v6 = vpop.eup %1936  ;;  %v898_v7 = vmul.f32 4.0, %v896_v5 }
 0x651   :  { %v765_v8 = vmul.f32 %v1937_v6, %v1921_v30 }
 0x652   :  { %1944 = vrcp.f32 %v898_v7 }
 0x653   :  { %v990_v9 = vpop.xlane.xlu0 %989  ;;  %v766_v10 = vpack.c.bf16 %v765_v8, %v764_v61  ;;  %v1939_v14 = vpop.eup %1938 }
 0x654   :  { %v992_v11 = vmul.f32 4.0, %v990_v9  ;;  %v987_v12 = vpop.xlane.xlu1 %986  ;;  %v719_v20 = vmul.f32 %v1939_v14, %v1923_v36 }
 0x655   :  { %v991_v15 = vmul.f32 4.0, %v987_v12  ;;  %1788 = vmatmul.mubr.msk.bf16.vlgmr.msra.gmra.mrb[16].mxu0 %vm207_vm5, %v766_v10 }
 0x656   :  { %1946 = vrcp.f32 %v992_v11  ;;  %1799 = vmatprep.mubr.msk.bf16.mxu0 %vm2070_vm0, %v2069_v1 }
 0x657   :  { %v1941_v16 = vpop.eup %1940  ;;  %1948 = vrcp.f32 %v991_v15  ;;  %v905_v18 = vpop.permute.xlu0 %904 }
 0x658   :  { %v720_v21 = vmul.f32 %v1941_v16, %v1925_v41  ;;  %1798 = vmatpush3.bf16.msra.mxu0 %v905_v18  ;;  %v1943_v13 = vpop.eup %1942  ;;  %v999_v19 = vpop.permute.xlu1 %998  ;;  %v1081_v41 = vpack.c.bf16 %v1066_v40, %v1061_v17  ;;  %v1078_v17 = vld [vmem:[#allocation5 + $0x98] sm:$0xff] }
 0x659   :  { %v901_v27 = vmul.f32 %v1943_v13, %v1927_v42  ;;  %v1072_v42 = vld [vmem:[#allocation5 + $0x68] sm:$0xff]  ;;  %v1702_v13 = vld [vmem:[%s2458_s7] ss:$0 sm:$0xff] }
 0x65a   :  { %v721_v22 = vpack.c.bf16 %v720_v21, %v719_v20  ;;  %v1087_v48 = vpack.c.bf16 %v1077_v43, %v1072_v42  ;;  %v1219_v42 = vld [vmem:[%s2460_s9] sm:$0xf] }
 0x65b   :  { %v1220_v43 = vpack.c.bf16 %v1219_v42, %v1219_v42 }
 0x65c   :  { %v1945_v26 = vpop.eup %1944  ;;  %1794 = vmatmul.mubr.msk.bf16.vlgmr.msra.gmra.mrb[16].mxu1 %vm207_vm5, %v721_v22 }
 0x65d   :  { %v902_v30 = vmul.f32 %v1945_v26, %v1929_v47  ;;  %1804 = vmatpush3.bf16.msra.mxu1 %v999_v19  ;;  %1805 = vmatprep.mubr.msk.bf16.mxu1 %vm2070_vm0, %v2069_v1  ;;  %v1065_v47 = vld [vmem:[#allocation5 + $0x30] sm:$0xff] }
 0x65e   :  { %1135 = vmatprep.subr.bf16.mxu1 %v1082_v39  ;;  %v1073_v39 = vld [vmem:[#allocation5 + $0x70] sm:$0xff] }
 0x65f   :  { %v903_v31 = vpack.c.bf16 %v902_v30, %v901_v27 }
 0x660   :  { %v1947_v32 = vpop.eup %1946 }
 0x661   :  { %v1949_v33 = vpop.eup %1948  ;;  %v996_v34 = vmul.f32 %v1947_v32, %v1931_v49  ;;  %1800 = vmatmul.mubr.msk.bf16.vlgmr.msra.gmra.mrb[20].mxu0 %vm207_vm5, %v903_v31  ;;  %v1080_v49 = vpack.c.bf16 %v1065_v47, %v1060_v45 }
 0x662   :  { %v995_v35 = vmul.f32 %v1949_v33, %v1933_v50  ;;  %1124 = vmatprep.mubr.bf16.mxu0 %v2068_v0  ;;  %v1059_v50 = vld [vmem:[#allocation5] sm:$0xff] }
 0x663   :  { %v1079_v54 = vpack.c.bf16 %v1064_v51, %v1059_v50  ;;  %1092 = vmatprep.subr.bf16.mxu0 %v1080_v49  ;;  %v1063_v33 = vld [vmem:[#allocation5 + $0x20] sm:$0xff] }
 0x664   :  { %v997_v36 = vpack.c.bf16 %v996_v34, %v995_v35  ;;  %v1068_v34 = vld [vmem:[#allocation5 + $0x48] sm:$0xff] }
 0x665   :  { %1093 = vmatpush1.bf16.msra.mxu0 %v1079_v54  ;;  %v1083_v37 = vpack.c.bf16 %v1068_v34, %v1063_v33 }
 0x666   :  { %1806 = vmatmul.mubr.msk.bf16.vlgmr.msra.gmra.mrb[20].mxu1 %vm207_vm5, %v997_v36  ;;  %1094 = vmatprep.subr.bf16.mxu0 %v1085_v58 }
 0x667   :  { %1167 = vmatprep.mubr.bf16.mxu1 %v2068_v0  ;;  %1136 = vmatpush1.bf16.msra.mxu1 %v1081_v41  ;;  %v1088_v41 = vpack.c.bf16 %v1078_v17, %v1073_v39 }
 0x668   :  { %1137 = vmatprep.subr.bf16.mxu1 %v1087_v48 }
 0x669   :  { %1095 = vmatpush1.bf16.msra.mxu0 %v1084_v2 }
 0x66a   :  { %1809 = vmatprep.subr.bf16.mxu0 %v2069_v1 }
 0x66b   :  { %1138 = vmatpush1.bf16.msra.mxu1 %v1086_v53 }
 0x66c   :  { %1817 = vmatprep.subr.bf16.mxu1 %v2069_v1 }
 0x728   :  { %v808_v3 = vpop.f32.mrb[16].mxu0 }
 0x729   :  { %v1789_v4 = vpop.f32.mrb[17].mxu0 }
 0x72a   :  { %v811_v5 = vpop.f32.mrb[18].mxu0 }
 0x72b   :  { %v1790_v6 = vpop.f32.mrb[19].mxu0 }
 0x72f   :  { %v852_v7 = vpop.f32.mrb[16].mxu1 }
 0x730   :  { %v853_v61 = vadd.f32 %v852_v7, %v808_v3  ;;  %v1795_v8 = vpop.f32.mrb[17].mxu1 }
 0x731   :  { %v855_v9 = vpop.f32.mrb[18].mxu1 }
 0x732   :  { %v856_v10 = vadd.f32 %v855_v9, %v811_v5  ;;  %v1796_v11 = vpop.f32.mrb[19].mxu1 }
 0x734   :  { %v944_v12 = vpop.f32.mrb[20].mxu0 }
 0x735   :  { %v951_v14 = vadd.f32 %v944_v12, %v853_v61  ;;  %v1801_v15 = vpop.f32.mrb[21].mxu0 }
 0x736   :  { %v947_v16 = vpop.f32.mrb[22].mxu0 }
 0x737   :  { %v952_v18 = vadd.f32 %v947_v16, %v856_v10  ;;  %v1802_v20 = vpop.f32.mrb[23].mxu0 }
 0x739   :  { %v1038_v21 = vpop.f32.mrb[20].mxu1 }
 0x73a   :  { %v1045_v22 = vadd.f32 %v1038_v21, %v951_v14  ;;  %v1807_v26 = vpop.f32.mrb[21].mxu1 }
 0x73b   :  { %v1041_v19 = vpop.f32.mrb[22].mxu1 }
 0x73c   :  { %v1054_v27 = vadd.f32 %v1702_v13, %v1045_v22  ;;  %v1046_v30 = vadd.f32 %v1041_v19, %v952_v18  ;;  %v1808_v31 = vpop.f32.mrb[23].mxu1 }
 0x73e   :  { %v1055_v32 = vadd.f32 %v1702_v13, %v1046_v30  ;;  %v1056_v35 = vmax.f32 %v1054_v27, 0.0 }
 0x740   :  { %v1057_v36 = vmax.f32 %v1055_v32, 0.0 }
 0x742   :  { %v1058_v38 = vpack.c.bf16 %v1057_v36, %v1056_v35 }
 0x744   :  { %1703 = vmatmul.mubr.msk.bf16.vlgmr.msra.gmra.mrb[24].mxu0 %vm582_vm6, %v1058_v38  ;;  %1704 = vmatmul.mubr.msk.bf16.vlgmr.msra.gmra.mrb[24].mxu1 %vm582_vm6, %v1058_v38  ;;  %v1090_v40 = vsel %vm582_vm6, %v1058_v38, 0 }
 0x745   :  { %1810 = vmatpush3.bf16.msra.mxu0 %v1083_v37  ;;  %1818 = vmatpush3.bf16.xpose.msra.mxu1 %v1090_v40 }
 0x746   :  { %1811 = vmatprep.subr.bf16.mxu0 %v2069_v1  ;;  %1813 = vmatprep.mubr.msk.bf16.mxu0 %vm2070_vm0, %v2069_v1 }
 0x747   :  { %1819 = vmatprep.mubr.msk.bf16.mxu1 %vm2070_vm0, %v2069_v1  ;;  %1829 = vmatprep.subr.bf16.mxu1 %v2069_v1 }
 0x749   :  { %1812 = vmatpush3.bf16.msra.mxu0 %v1088_v41 }
 0x74a   :  { %1823 = vmatprep.subr.bf16.mxu0 %v2069_v1 }
 0x74c   :  { %1814 = vmatmul.mubr.msk.bf16.vlgmr.msra.gmra.mrb[28].mxu0 %vm582_vm6, %v1058_v38  ;;  %1820 = vmatmul.mubr.msk.bf16.vlgmr.msra.gmra.mrb[28].mxu1 %vm582_vm6, %v1220_v43 }
 0x74d   :  { %1825 = vmatprep.mubr.msk.bf16.mxu0 %vm2070_vm0, %v2069_v1  ;;  %1831 = vmatprep.mubr.msk.bf16.mxu1 %vm2070_vm0, %v2069_v1 }
 0x817   :  { %v1126_v45 = vpop.f32.mrb[24].mxu0  ;;  %v2370_v47 = vpop.f32.mrb[24].mxu1 }
 0x818   :  { %v1128_v48 = vpop.f32.mrb[25].mxu0  ;;  %v2372_v49 = vpop.f32.mrb[25].mxu1 }
 0x819   :  { %v1130_v50 = vpop.f32.mrb[26].mxu0  ;;  %v2374_v51 = vpop.f32.mrb[26].mxu1 }
 0x81a   :  { %v1264_v52 = vpack.c.bf16 %v1130_v50, %v1126_v45  ;;  %v1266_v54 = vpack.c.bf16 %v2374_v51, %v2370_v47  ;;  %v1132_v57 = vpop.f32.mrb[27].mxu0  ;;  %v2378_v53 = vpop.f32.mrb[27].mxu1 }
 0x81b   :  { %v1265_v59 = vpack.c.bf16 %v1132_v57, %v1128_v48  ;;  %v1267_v60 = vpack.c.bf16 %v2378_v53, %v2372_v49 }
 0x81c   :  { %1830 = vmatpush3.bf16.msra.mxu1 %v1264_v52 }
 0x81d   :  { %1824 = vmatpush3.bf16.msra.mxu0 %v1265_v59  ;;  %1841 = vmatprep.subr.bf16.mxu1 %v2069_v1 }
 0x81e   :  { %1835 = vmatprep.subr.bf16.mxu0 %v2069_v1 }
 0x81f   :  { %v1212_v58 = vpop.f32.mrb[28].mxu0  ;;  %v1258_v62 = vpop.f32.mrb[28].mxu1 }
 0x820   :  { %1316 = vperm.xlu1 %1879, %v1212_v58   ;;  %v1815_v63 = vpop.f32.mrb[29].mxu0  ;;  %v1821_v2 = vpop.f32.mrb[29].mxu1  ;;  %v1326_v7 = vrot.slane %v1258_v62, %v2210_v29  ;;  %v1459_v12 = vrot.slane %v1258_v62, %v2216_v44  ;;  %v1550_v44 = vrot.slane %v1258_v62, %v2223_v55 }
 0x821   :  { %v1215_v3 = vpop.f32.mrb[30].mxu0  ;;  %v1261_v4 = vpop.f32.mrb[30].mxu1 }
 0x822   :  { %1320 = vperm.xlu0 %1881, %v1215_v3   ;;  %v1816_v5 = vpop.f32.mrb[31].mxu0  ;;  %v1822_v6 = vpop.f32.mrb[31].mxu1 }
 0x824   :  { %1880 = vset.pattern.permute.xlu1 %v2068_v0  ;;  %v1281_v0 = vrot.slane %v1258_v62, %v2208_v28 }
 0x825   :  { %1270 = vperm.xlu1 %1880, %v1212_v58  }
 0x826   :  { %1882 = vset.pattern.permute.xlu0 %v2072_v23 }
 0x827   :  { %1449 = vperm.xlu0 %1882, %v1212_v58  }
 0x829   :  { %1275 = vperm.xlu1 %1880, %v1215_v3  }
 0x82b   :  { %1885 = vset.pattern.permute.xlu0 %v2073_v24 }
 0x82c   :  { %1544 = vperm.xlu0 %1885, %v1215_v3  }
 0x82d   :  { %1883 = vset.pattern.permute.xlu1 %v2072_v23 }
 0x82e   :  { %1453 = vperm.xlu1 %1883, %v1215_v3  }
 0x832   :  { %1884 = vset.pattern.permute.xlu1 %v2073_v24 }
 0x833   :  { %1540 = vperm.xlu1 %1884, %v1212_v58  }
 0x89f   :  { %v1317_v61 = vpop.permute.xlu1 %1316 }
 0x8a0   :  { %v1327_v8 = vadd.f32 %v1326_v7, %v1317_v61 }
 0x8a1   :  { %v1321_v9 = vpop.permute.xlu0 %1320 }
 0x8a2   :  { %v1329_v10 = vmul.f32 0.2, %v1327_v8  ;;  %v1328_v11 = vadd.f32 %v1326_v7, %v1321_v9 }
 0x8a4   :  { %v1331_v14 = vmax.f32 %v1327_v8, %v1329_v10  ;;  %v1330_v15 = vmul.f32 0.2, %v1328_v11  ;;  %v1271_v16 = vpop.permute.xlu1 %1270 }
 0x8a5   :  { %v1282_v18 = vadd.f32 %v1281_v0, %v1271_v16 }
 0x8a6   :  { %v1332_v23 = vmax.f32 %v1328_v11, %v1330_v15  ;;  %v1450_v20 = vpop.permute.xlu0 %1449  ;;  %v1333_v24 = vadd.f32 %v1331_v14, %v2218_v46 }
 0x8a7   :  { %v1284_v21 = vmul.f32 0.2, %v1282_v18  ;;  %v1460_v13 = vadd.f32 %v1459_v12, %v1450_v20 }
 0x8a8   :  { %v1276_v29 = vpop.permute.xlu1 %1275  ;;  %v1335_v22 = vsel %vm207_vm5, %v1333_v24, -inf  ;;  %v1334_v26 = vadd.f32 %v1332_v23, %v2225_v56 }
 0x8a9   :  { %v1286_v28 = vmax.f32 %v1282_v18, %v1284_v21  ;;  %v1462_v19 = vmul.f32 0.2, %v1460_v13  ;;  %v1283_v27 = vadd.f32 %v1281_v0, %v1276_v29  ;;  %1336 = vmax.xlane.f32.xlu1 %v1335_v22 }
 0x8aa   :  { %v1338_v30 = vsel %vm207_vm5, %v1334_v26, -inf }
 0x8ab   :  { %v1464_v31 = vmax.f32 %v1460_v13, %v1462_v19  ;;  %v1285_v32 = vmul.f32 0.2, %v1283_v27  ;;  %v1545_v33 = vpop.permute.xlu0 %1544  ;;  %1339 = vmax.xlane.f32.xlu0 %v1338_v30  ;;  %v1288_v34 = vadd.f32 %v1286_v28, %v2218_v46 }
 0x8ac   :  { %v1552_v35 = vadd.f32 %v1550_v44, %v1545_v33 }
 0x8ad   :  { %v1287_v36 = vmax.f32 %v1283_v27, %v1285_v32  ;;  %v1454_v37 = vpop.permute.xlu1 %1453  ;;  %v1290_v38 = vsel %vm207_vm5, %v1288_v34, -inf  ;;  %v1466_v39 = vadd.f32 %v1464_v31, %v2218_v46 }
 0x8ae   :  { %v1554_v17 = vmul.f32 0.2, %v1552_v35  ;;  %v1461_v40 = vadd.f32 %v1459_v12, %v1454_v37  ;;  %1291 = vmax.xlane.f32.xlu1 %v1290_v38 }
 0x8af   :  { %v1289_v55 = vadd.f32 %v1287_v36, %v2225_v56  ;;  %v1468_v43 = vsel %vm207_vm5, %v1466_v39, -inf }
 0x8b0   :  { %v1463_v41 = vmul.f32 0.2, %v1461_v40  ;;  %v1556_v45 = vmax.f32 %v1552_v35, %v1554_v17 }
 0x8b1   :  { %v1293_v42 = vsel %vm207_vm5, %v1289_v55, -inf }
 0x8b2   :  { %v1465_v48 = vmax.f32 %v1461_v40, %v1463_v41  ;;  %v1541_v50 = vpop.permute.xlu1 %1540  ;;  %1294 = vmax.xlane.f32.xlu0 %v1293_v42  ;;  %1469 = vmax.xlane.f32.xlu1 %v1468_v43  ;;  %v1558_v62 = vadd.f32 %v1556_v45, %v2225_v56 }
 0x8b3   :  { %v1551_v52 = vadd.f32 %v1550_v44, %v1541_v50 }
 0x8b4   :  { %v1467_v57 = vadd.f32 %v1465_v48, %v2225_v56  ;;  %v1562_v3 = vsel %vm207_vm5, %v1558_v62, -inf }
 0x8b5   :  { %v1553_v59 = vmul.f32 0.2, %v1551_v52 }
 0x8b6   :  { %v1471_v58 = vsel %vm207_vm5, %v1467_v57, -inf }
 0x8b7   :  { %v1555_v63 = vmax.f32 %v1551_v52, %v1553_v59  ;;  %1472 = vmax.xlane.f32.xlu0 %v1471_v58 }
 0x8b9   :  { %v1557_v2 = vadd.f32 %v1555_v63, %v2218_v46 }
 0x8bb   :  { %1563 = vmax.xlane.f32.xlu0 %v1562_v3  ;;  %v1559_v4 = vsel %vm207_vm5, %v1557_v2, -inf }
 0x8bc   :  { %1560 = vmax.xlane.f32.xlu1 %v1559_v4 }
 0x936   :  { %v1337_v5 = vpop.xlane.xlu1 %1336 }
 0x937   :  { %v1341_v6 = vsub.f32 %v1333_v24, %v1337_v5 }
 0x938   :  { %v1340_v7 = vpop.xlane.xlu0 %1339 }
 0x939   :  { %v1343_v61 = vmul.f32 1.442695, %v1341_v6  ;;  %v1342_v8 = vsub.f32 %v1334_v26, %v1340_v7 }
 0x93b   :  { %1950 = vpow2.f32 %v1343_v61  ;;  %v1345_v9 = vmul.f32 1.442695, %v1342_v8  ;;  %v1292_v0 = vpop.xlane.xlu1 %1291 }
 0x93c   :  { %v1296_v10 = vsub.f32 %v1288_v34, %v1292_v0 }
 0x93d   :  { %1952 = vpow2.f32 %v1345_v9 }
 0x93e   :  { %v1298_v56 = vmul.f32 1.442695, %v1296_v10 }
 0x93f   :  { %v1295_v11 = vpop.xlane.xlu0 %1294  ;;  %v1470_v12 = vpop.xlane.xlu1 %1469 }
 0x940   :  { %1954 = vpow2.f32 %v1298_v56  ;;  %v1297_v46 = vsub.f32 %v1289_v55, %v1295_v11  ;;  %v1474_v14 = vsub.f32 %v1466_v39, %v1470_v12 }
 0x942   :  { %v1300_v15 = vmul.f32 1.442695, %v1297_v46  ;;  %v1476_v16 = vmul.f32 1.442695, %v1474_v14 }
 0x944   :  { %1956 = vpow2.f32 %v1300_v15  ;;  %v1473_v18 = vpop.xlane.xlu0 %1472 }
 0x945   :  { %v1951_v23 = vpop.eup %1950  ;;  %1958 = vpow2.f32 %v1476_v16  ;;  %v1475_v20 = vsub.f32 %v1467_v57, %v1473_v18 }
 0x946   :  { %v1347_v24 = vsel %vm207_vm5, %v1951_v23, 0.0 }
 0x947   :  { %v1953_v21 = vpop.eup %1952  ;;  %v1478_v13 = vmul.f32 1.442695, %v1475_v20  ;;  %1348 = vadd.xlane.f32.xlu1 %v1347_v24 }
 0x948   :  { %v1564_v29 = vpop.xlane.xlu0 %1563  ;;  %v1350_v22 = vsel %vm207_vm5, %v1953_v21, 0.0 }
 0x949   :  { %1960 = vpow2.f32 %v1478_v13  ;;  %v1566_v26 = vsub.f32 %v1558_v62, %v1564_v29  ;;  %1351 = vadd.xlane.f32.xlu0 %v1350_v22  ;;  %v1561_v28 = vpop.xlane.xlu1 %1560 }
 0x94a   :  { %v1955_v19 = vpop.eup %1954  ;;  %v1565_v27 = vsub.f32 %v1557_v2, %v1561_v28 }
 0x94b   :  { %v1569_v44 = vmul.f32 1.442695, %v1566_v26  ;;  %v1302_v30 = vsel %vm207_vm5, %v1955_v19, 0.0 }
 0x94c   :  { %v1567_v31 = vmul.f32 1.442695, %v1565_v27  ;;  %1303 = vadd.xlane.f32.xlu1 %v1302_v30 }
 0x94d   :  { %1962 = vpow2.f32 %v1569_v44 }
 0x94e   :  { %v1957_v32 = vpop.eup %1956  ;;  %1964 = vpow2.f32 %v1567_v31 }
 0x94f   :  { %v1959_v33 = vpop.eup %1958  ;;  %v1305_v34 = vsel %vm207_vm5, %v1957_v32, 0.0 }
 0x950   :  { %1306 = vadd.xlane.f32.xlu0 %v1305_v34  ;;  %v1480_v35 = vsel %vm207_vm5, %v1959_v33, 0.0 }
 0x951   :  { %1481 = vadd.xlane.f32.xlu1 %v1480_v35 }
 0x953   :  { %v1961_v36 = vpop.eup %1960 }
 0x954   :  { %v1483_v37 = vsel %vm207_vm5, %v1961_v36, 0.0 }
 0x955   :  { %1484 = vadd.xlane.f32.xlu0 %v1483_v37 }
 0x957   :  { %v1963_v38 = vpop.eup %1962 }
 0x958   :  { %v1965_v39 = vpop.eup %1964  ;;  %v1574_v17 = vsel %vm207_vm5, %v1963_v38, 0.0 }
 0x959   :  { %1575 = vadd.xlane.f32.xlu0 %v1574_v17  ;;  %v1571_v40 = vsel %vm207_vm5, %v1965_v39, 0.0 }
 0x95a   :  { %1572 = vadd.xlane.f32.xlu1 %v1571_v40 }
 0x9d4   :  { %v1349_v55 = vpop.xlane.xlu1 %1348 }
 0x9d5   :  { %v1353_v41 = vmul.f32 4.0, %v1349_v55 }
 0x9d6   :  { %v1352_v42 = vpop.xlane.xlu0 %1351 }
 0x9d7   :  { %1966 = vrcp.f32 %v1353_v41  ;;  %v1354_v43 = vmul.f32 4.0, %v1352_v42 }
 0x9d9   :  { %1968 = vrcp.f32 %v1354_v43  ;;  %v1304_v45 = vpop.xlane.xlu1 %1303 }
 0x9da   :  { %v1308_v48 = vmul.f32 4.0, %v1304_v45 }
 0x9dc   :  { %1970 = vrcp.f32 %v1308_v48 }
 0x9dd   :  { %v1307_v50 = vpop.xlane.xlu0 %1306 }
 0x9de   :  { %v1309_v52 = vmul.f32 4.0, %v1307_v50  ;;  %v1482_v57 = vpop.xlane.xlu1 %1481 }
 0x9df   :  { %v1486_v59 = vmul.f32 4.0, %v1482_v57 }
 0x9e0   :  { %1972 = vrcp.f32 %v1309_v52 }
 0x9e1   :  { %v1967_v58 = vpop.eup %1966  ;;  %1974 = vrcp.f32 %v1486_v59 }
 0x9e2   :  { %v1485_v62 = vpop.xlane.xlu0 %1484  ;;  %v1357_v3 = vmul.f32 %v1967_v58, %v1951_v23 }
 0x9e3   :  { %v1969_v63 = vpop.eup %1968  ;;  %v1487_v2 = vmul.f32 4.0, %v1485_v62 }
 0x9e4   :  { %v1358_v4 = vmul.f32 %v1969_v63, %v1953_v21 }
 0x9e5   :  { %1976 = vrcp.f32 %v1487_v2 }
 0x9e6   :  { %v1576_v5 = vpop.xlane.xlu0 %1575  ;;  %v1359_v6 = vpack.c.bf16 %v1358_v4, %v1357_v3  ;;  %v1971_v8 = vpop.eup %1970 }
 0x9e7   :  { %v1578_v7 = vmul.f32 4.0, %v1576_v5  ;;  %v1573_v61 = vpop.xlane.xlu1 %1572  ;;  %v1312_v10 = vmul.f32 %v1971_v8, %v1955_v19 }
 0x9e8   :  { %v1577_v9 = vmul.f32 4.0, %v1573_v61  ;;  %1826 = vmatmul.mubr.msk.bf16.vlgmr.msra.gmra.mrb[32].mxu0 %vm207_vm5, %v1359_v6 }
 0x9e9   :  { %1978 = vrcp.f32 %v1578_v7  ;;  %1836 = vmatpush3.bf16.msra.mxu0 %v1266_v54  ;;  %1837 = vmatprep.mubr.msk.bf16.mxu0 %vm2070_vm0, %v2069_v1 }
 0x9ea   :  { %v1973_v0 = vpop.eup %1972  ;;  %1980 = vrcp.f32 %v1577_v9 }
 0x9eb   :  { %v1313_v56 = vmul.f32 %v1973_v0, %v1957_v32  ;;  %v1975_v11 = vpop.eup %1974  ;;  %v1711_v32 = vld [vmem:[%s2461_s10] ss:$0 sm:$0xff]  ;;  %s2078_s10 = smov [#allocation7]  }
 0x9ec   :  { %v1490_v14 = vmul.f32 %v1975_v11, %v1959_v33  ;;  %v1642_v33 = vand.u32 127, %v195_v25  ;;  %s1675_s5 = sshll.u32 %s2078_s10, 4  ;;  %s1676_s5 = int_to_ptr.vmem [resolvable:$true] %s1675_s5 }
 0x9ed   :  { %v1314_v12 = vpack.c.bf16 %v1313_v56, %v1312_v10  ;;  %s2034_s18 = scalar_lea.vmem %s1676_s5, 256  ;;  %p2039_p3 = scmp.lt.s32.totalorder %s1676_s5, %s1676_s5 }
 0x9ee   :  { %vm1643_vm7 = vcmp.lt.s32.totalorder %v1642_v33, 4  ;;  %p2035_p2 = scmp.ne.s32.totalorder %s1676_s5, %s2034_s18  ;;  %p2040_p4 = scmp.lt.s32.totalorder %s2034_s18, %s2034_s18 }
 0x9ef   :  { %v1977_v46 = vpop.eup %1976  ;;  %1832 = vmatmul.mubr.msk.bf16.vlgmr.msra.gmra.mrb[32].mxu1 %vm207_vm5, %v1314_v12 }
 0x9f0   :  { %v1491_v15 = vmul.f32 %v1977_v46, %v1961_v36  ;;  %1842 = vmatpush3.bf16.msra.mxu1 %v1267_v60  ;;  %1843 = vmatprep.mubr.msk.bf16.mxu1 %vm2070_vm0, %v2069_v1  ;;  %p2041_p5 = por %p2040_p4, %p2039_p3 }
 0x9f2   :  { %v1492_v47 = vpack.c.bf16 %v1491_v15, %v1490_v14  ;;  %p2042_p6 = pnand %p2041_p5, %p2035_p2 }
 0x9f3   :  { %v1979_v51 = vpop.eup %1978 }
 0x9f4   :  { %v1981_v54 = vpop.eup %1980  ;;  %v1582_v16 = vmul.f32 %v1979_v51, %v1963_v38  ;;  %1838 = vmatmul.mubr.msk.bf16.vlgmr.msra.gmra.mrb[36].mxu0 %vm207_vm5, %v1492_v47 }
 0x9f5   :  { %v1581_v18 = vmul.f32 %v1981_v54, %v1965_v39 }
 0x9f7   :  { %v1583_v23 = vpack.c.bf16 %v1582_v16, %v1581_v18 }
 0x9f9   :  { %1844 = vmatmul.mubr.msk.bf16.vlgmr.msra.gmra.mrb[36].mxu1 %vm207_vm5, %v1583_v23 }
 0xabb   :  { %v1397_v20 = vpop.f32.mrb[32].mxu0 }
 0xabc   :  { %v1827_v24 = vpop.f32.mrb[33].mxu0 }
 0xabd   :  { %v1400_v21 = vpop.f32.mrb[34].mxu0 }
 0xabe   :  { %v1828_v13 = vpop.f32.mrb[35].mxu0 }
 0xac2   :  { %v1441_v29 = vpop.f32.mrb[32].mxu1 }
 0xac3   :  { %v1442_v49 = vadd.f32 %v1441_v29, %v1397_v20  ;;  %v1833_v53 = vpop.f32.mrb[33].mxu1 }
 0xac4   :  { %v1444_v60 = vpop.f32.mrb[34].mxu1 }
 0xac5   :  { %v1445_v22 = vadd.f32 %v1444_v60, %v1400_v21  ;;  %v1834_v1 = vpop.f32.mrb[35].mxu1 }
 0xac7   :  { %v1530_v26 = vpop.f32.mrb[36].mxu0 }
 0xac8   :  { %v1537_v28 = vadd.f32 %v1530_v26, %v1442_v49  ;;  %v1839_v19 = vpop.f32.mrb[37].mxu0 }
 0xac9   :  { %v1533_v27 = vpop.f32.mrb[38].mxu0 }
 0xaca   :  { %v1538_v44 = vadd.f32 %v1533_v27, %v1445_v22  ;;  %v1840_v30 = vpop.f32.mrb[39].mxu0 }
 0xacc   :  { %v1621_v31 = vpop.f32.mrb[36].mxu1 }
 0xacd   :  { %v1628_v34 = vadd.f32 %v1621_v31, %v1537_v28  ;;  %v1845_v35 = vpop.f32.mrb[37].mxu1 }
 0xace   :  { %v1624_v36 = vpop.f32.mrb[38].mxu1 }
 0xacf   :  { %v1637_v37 = vadd.f32 %v1711_v32, %v1628_v34  ;;  %v1629_v38 = vadd.f32 %v1624_v36, %v1538_v44  ;;  %v1846_v39 = vpop.f32.mrb[39].mxu1 }
 0xad1   :  { %v1638_v17 = vadd.f32 %v1711_v32, %v1629_v38  ;;  %v1639_v40 = vmax.f32 %v1637_v37, 0.0 }
 0xad3   :  { %v1644_v55 = vsel %vm1643_vm7, %v1639_v40, -1e+30  ;;  %v1640_v41 = vmax.f32 %v1638_v17, 0.0 }
 0xad4   :  { %1646 = vmax.xlane.f32.xlu1 %v1644_v55 }
 0xad5   :  { %v1645_v42 = vsel %vm1643_vm7, %v1640_v41, -1e+30 }
 0xad6   :  { %1648 = vmax.xlane.f32.xlu0 %v1645_v42 }
 0xb61   :  { %v1647_v43 = vpop.xlane.xlu1 %1646 }
 0xb62   :  { %v1650_v45 = vsub.f32 %v1644_v55, %v1647_v43 }
 0xb63   :  { %v1649_v48 = vpop.xlane.xlu0 %1648 }
 0xb64   :  { %v1652_v25 = vmul.f32 1.442695, %v1650_v45  ;;  %v1651_v50 = vsub.f32 %v1645_v42, %v1649_v48 }
 0xb66   :  { %1982 = vpow2.f32 %v1652_v25  ;;  %v1654_v52 = vmul.f32 1.442695, %v1651_v50 }
 0xb68   :  { %1984 = vpow2.f32 %v1654_v52 }
 0xb70   :  { %v1983_v57 = vpop.eup %1982 }
 0xb71   :  { %1656 = vadd.xlane.f32.xlu1 %v1983_v57 }
 0xb72   :  { %v1985_v59 = vpop.eup %1984 }
 0xb73   :  { %1658 = vadd.xlane.f32.xlu0 %v1985_v59 }
 0xbfe   :  { %v1657_v58 = vpop.xlane.xlu1 %1656 }
 0xbff   :  { %1986 = vlog2.f32 %v1657_v58 }
 0xc00   :  { %v1659_v62 = vpop.xlane.xlu0 %1658 }
 0xc01   :  { %1988 = vlog2.f32 %v1659_v62 }
 0xc09   :  { %v1987_v63 = vpop.eup %1986 }
 0xc0a   :  { %v1661_v2 = vmul.f32 0.6931472, %v1987_v63 }
 0xc0b   :  { %v1989_v3 = vpop.eup %1988 }
 0xc0c   :  { %v1664_v4 = vsub.f32 %v1650_v45, %v1661_v2  ;;  %v1663_v5 = vmul.f32 0.6931472, %v1989_v3 }
 0xc0e   :  { %v1666_v6 = vsel %vm1643_vm7, %v1664_v4, 0.0  ;;  %v1665_v7 = vsub.f32 %v1651_v50, %v1663_v5 }
 0xc0f   :  { %1668 = vst [vmem:[#allocation7] sm:$0xff] %v1666_v6 }
 0xc10   :  { %v1667_v61 = vsel %vm1643_vm7, %v1665_v7, 0.0 }
 0xc11   :  { %1669 = vst [vmem:[#allocation7 + $0x8] sm:$0xff] %v1667_v61 }
 0xc12   :  { %2045 = shalt.err (!%p2042_p6)
}
 0xc13   :  { %s2046_s25 = scalar_lea.hbm %s2462_s11, 256 }
 0xc14   :  { %p2047_p7 = scmp.ne.s32.totalorder %s2462_s11, %s2046_s25  ;;  %p2050_p8 = scmp.lt.u32.totalorder %s2046_s25, %s2462_s11 }
 0xc16   :  { %p2052_p9 = pnand %p2050_p8, %p2047_p7 }
 0xc18   :  { %2055 = shalt.err (!%p2052_p9)
}
 0xc19   :  { %s2079_s29 = smov 128   ;;  %s2080_s30 = smov 8  }
 0xc1a   :  { %1681 = dma.vmem_to_hbm [thread:$0]  %s1676_s5, 256, %s2462_s11, [#allocation4], %s2079_s29, %s2079_s29, %s2080_s30  }
 0xc1b   :  { %2060 = dma.done.wait [#allocation4], 256  }
 0xc1c   :  { %2061 = vsyncadd [#allocation4], 4294967040 }
 0xc1d   :  { %1685 = vsyncpa [#allocation3], 1 }
 0xc1e   :  { %1686 = vsyncpa [#allocation6], 1 }
 0xc1f   :  { %1687 = vsyncpa [#allocation4], 1 }

</bundles_post_ra>
